<compile_context>
chip_gen: v7x
topology: tpu7x:2x2x1
jax: 0.10.0
libtpu: 0.0.40
codegen_flags: <defaults>
</compile_context>

<pallas_src>
import jax
import jax.numpy as jnp
from jax.experimental import pallas as pl
from jax.experimental.pallas import tpu as pltpu  # noqa: F401  (TPU backend)

# Small, module-consistent sizes.
D_MODEL = 32
NHEAD = 4
NUM_LAYERS = 2
DIM_FF = 64
SEQ = 8
BATCH = 2
EPS = 1e-5                      # torch LayerNorm default
HEAD_DIM = D_MODEL // NHEAD

# ---- packed matrix slab (per layer), every matrix stored with last dim = D_MODEL ----
_ROW_INW = 0                          # in_proj weight   (3D, D)  (Q rows pre-scaled)
_ROW_OWT = 3 * D_MODEL                # out_proj.weight^T (D, D)  rows ordered (h, j)
_ROW_W1 = 4 * D_MODEL                 # linear1.weight   (F, D)
_ROW_W2T = 4 * D_MODEL + DIM_FF       # linear2.weight^T (F, D)
_MAT_ROWS = 4 * D_MODEL + 2 * DIM_FF  # = 256

# ---- vec slab (per layer) rows, last dim = D_MODEL ----
_VROW_LN1W, _VROW_LN1B = 0, 1
_VROW_LN2W, _VROW_LN2B = 2, 3
_VROW_OUTB, _VROW_B2 = 4, 5
_VROW_INB = 8                          # rows [8, 8+3H): in_proj bias as (3H, hd) in lanes [0, hd)
_VEC_ROWS = _VROW_INB + 3 * NHEAD      # = 20


def _layernorm(x, w, b):
    inv_d = 1.0 / float(x.shape[-1])
    mu = jnp.sum(x, axis=-1, keepdims=True) * inv_d
    xc = x - mu
    var = jnp.sum(xc * xc, axis=-1, keepdims=True) * inv_d
    return xc * jax.lax.rsqrt(var + EPS) * w + b


def transformer_kernel(x_ref, mat_ref, vec_ref, b1_ref, out_ref, a_ref):
    B, S, D = x_ref.shape
    H = NHEAD
    hd = D // H
    R = B * S

    x = x_ref[...].reshape(R, D)              # residual stream, rows = (b, s)

    A = None
    for l in range(NUM_LAYERS):                # static unroll: no layer grid
        # ---- per-layer parameters (static slab slices, lane offset 0) ----
        ln1_w = vec_ref[l, _VROW_LN1W:_VROW_LN1W + 1, :]
        ln1_b = vec_ref[l, _VROW_LN1B:_VROW_LN1B + 1, :]
        ln2_w = vec_ref[l, _VROW_LN2W:_VROW_LN2W + 1, :]
        ln2_b = vec_ref[l, _VROW_LN2B:_VROW_LN2B + 1, :]
        out_b = vec_ref[l, _VROW_OUTB:_VROW_OUTB + 1, :]
        b2 = vec_ref[l, _VROW_B2:_VROW_B2 + 1, :]
        in_b = vec_ref[l, _VROW_INB:_VROW_INB + 3 * H, 0:hd].reshape(3 * H, 1, hd)
        b1 = b1_ref[l]                                              # (1, F)

        in_w = mat_ref[l, _ROW_INW:_ROW_INW + 3 * D, :]             # (3D, D)
        ow_h = mat_ref[l, _ROW_OWT:_ROW_OWT + D, :].reshape(H, hd, D)
        w1 = mat_ref[l, _ROW_W1:_ROW_W1 + DIM_FF, :]                # (F, D)
        w2t = mat_ref[l, _ROW_W2T:_ROW_W2T + DIM_FF, :]             # (F, D)

        # ---- self-attention block (pre-norm) ----
        x2 = _layernorm(x, ln1_w, ln1_b)                            # (R, D)
        # fused QKV, produced transposed: qkv_t[c, r] = sum_d in_w[c, d] * x2[r, d]
        qkv_t = jnp.einsum('ed,rd->er', in_w, x2,
                           preferred_element_type=jnp.float32)      # (3D, R)
        # (3D, R) -> (3H, hd, R) is a free sublane split; one batched minor-2 swap
        # folds heads without any lane-slice/concat chain.
        qkv = jnp.swapaxes(qkv_t.reshape(3 * H, hd, R), 1, 2) + in_b  # (3H, R, hd)
        q = qkv[0:H].reshape(H * B, S, hd)                          # n = h*B + b
        k = qkv[H:2 * H].reshape(H * B, S, hd)
        v = qkv[2 * H:3 * H].reshape(H * B, S, hd)

        # scale 1/sqrt(hd) is pre-folded into the Q rows of in_w / in_b at pack time
        s = jnp.einsum('nqd,nkd->nqk', q, k,
                       preferred_element_type=jnp.float32)          # (H*B, S, S)
        s = s - jnp.max(s, axis=-1, keepdims=True)
        p = jnp.exp(s)
        p = p / jnp.sum(p, axis=-1, keepdims=True)                  # exact softmax (torch parity)

        ctx = jnp.einsum('nqk,nkd->nqd', p, v,
                         preferred_element_type=jnp.float32)        # (H*B, S, hd)
        # out-proj with head-reshaped weight: no lane-concat un-fold
        attn = jnp.einsum('hrj,hjd->hrd', ctx.reshape(H, R, hd), ow_h,
                          preferred_element_type=jnp.float32)       # (H, R, D)
        x = x + jnp.sum(attn, axis=0) + out_b                       # residual 1

        # ---- feed-forward block (pre-norm) ----
        y = _layernorm(x, ln2_w, ln2_b)
        h1 = jnp.maximum(
            jnp.einsum('rd,fd->rf', y, w1,
                       preferred_element_type=jnp.float32) + b1, 0.0)   # (R, F) relu
        x = x + jnp.dot(h1, w2t, preferred_element_type=jnp.float32) + b2   # residual 2

        if l == NUM_LAYERS - 1:
            # head-averaged attention map of the LAST layer only (static gate)
            A = jnp.sum(p.reshape(H, B, S, S), axis=0) * (1.0 / H)  # (B, S, S)

    lnf_w = vec_ref[NUM_LAYERS, 0:1, :]
    lnf_b = vec_ref[NUM_LAYERS, 1:2, :]
    out_ref[...] = _layernorm(x, lnf_w, lnf_b).reshape(B, S, D)
    a_ref[...] = A


@jax.jit
def transformer_forward(src, mats, vec, b1):
    """src: (S, B, D) -> (out (S, B, D), A (B, S, S))."""
    x = jnp.transpose(src, (1, 0, 2)).astype(jnp.float32)   # (B, S, D)
    B, S, D = x.shape

    out_bsd, A = pl.pallas_call(
        transformer_kernel,
        out_shape=[
            jax.ShapeDtypeStruct((B, S, D), jnp.float32),
            jax.ShapeDtypeStruct((B, S, S), jnp.float32),
        ],
    )(x, mats, vec, b1)

    return jnp.transpose(out_bsd, (1, 0, 2)), A


def init_params(key):
    """Deterministic synthetic init (xavier-uniform for matrices, zeros/ones for
    biases / LayerNorm, matching the module's _reset_parameters spirit)."""
    L, D, F = NUM_LAYERS, D_MODEL, DIM_FF

    def xavier(k, shape):
        fan_out, fan_in = shape[-2], shape[-1]
        limit = (6.0 / (fan_in + fan_out)) ** 0.5
        return jax.random.uniform(k, shape, jnp.float32, -limit, limit)

    ks = jax.random.split(key, 4)
    return {
        'ln1_w': jnp.ones((L, 1, D), jnp.float32),
        'ln1_b': jnp.zeros((L, 1, D), jnp.float32),
        'ln2_w': jnp.ones((L, 1, D), jnp.float32),
        'ln2_b': jnp.zeros((L, 1, D), jnp.float32),
        'lnf_w': jnp.ones((1, D), jnp.float32),
        'lnf_b': jnp.zeros((1, D), jnp.float32),
        'in_w': xavier(ks[0], (L, 3 * D, D)),     # torch in_proj_weight
        'in_b': jnp.zeros((L, 1, 3 * D), jnp.float32),
        'out_w': xavier(ks[1], (L, D, D)),        # torch out_proj.weight
        'out_b': jnp.zeros((L, 1, D), jnp.float32),
        'w1': xavier(ks[2], (L, F, D)),           # linear1.weight
        'b1': jnp.zeros((L, 1, F), jnp.float32),
        'w2': xavier(ks[3], (L, D, F)),           # linear2.weight
        'b2': jnp.zeros((L, 1, D), jnp.float32),
    }


def pack_params(params):
    """One-time host-side packing of torch-convention params into 3 slabs so the
    kernel sees 4 input DMAs instead of 16, with all weight transposes /
    head splits / the 1/sqrt(hd) scale folded in here (outside the hot path)."""
    L, D, F, H, hd = NUM_LAYERS, D_MODEL, DIM_FF, NHEAD, HEAD_DIM
    scale = 1.0 / float(hd) ** 0.5

    in_w = params['in_w'].astype(jnp.float32)
    in_w = in_w.at[:, :D, :].multiply(scale)                 # fold q-scale into Wq
    in_b = params['in_b'].reshape(L, 3 * D).astype(jnp.float32)
    in_b = in_b.at[:, :D].multiply(scale)                    # ... and into bq

    mats = jnp.concatenate([
        in_w,                                                # (L, 3D, D)
        jnp.swapaxes(params['out_w'], 1, 2),                 # (L, D, D)  = out_w.T, rows (h, j)
        params['w1'],                                        # (L, F, D)
        jnp.swapaxes(params['w2'], 1, 2),                    # (L, F, D)  = w2.T
    ], axis=1).astype(jnp.float32)                           # (L, 256, 32)
    assert mats.shape == (L, _MAT_ROWS, D)

    vec = jnp.zeros((L + 1, _VEC_ROWS, D), jnp.float32)
    vec = vec.at[:L, _VROW_LN1W, :].set(params['ln1_w'].reshape(L, D))
    vec = vec.at[:L, _VROW_LN1B, :].set(params['ln1_b'].reshape(L, D))
    vec = vec.at[:L, _VROW_LN2W, :].set(params['ln2_w'].reshape(L, D))
    vec = vec.at[:L, _VROW_LN2B, :].set(params['ln2_b'].reshape(L, D))
    vec = vec.at[:L, _VROW_OUTB, :].set(params['out_b'].reshape(L, D))
    vec = vec.at[:L, _VROW_B2, :].set(params['b2'].reshape(L, D))
    vec = vec.at[:L, _VROW_INB:_VROW_INB + 3 * H, :hd].set(in_b.reshape(L, 3 * H, hd))
    vec = vec.at[L, 0, :].set(params['lnf_w'].reshape(D))
    vec = vec.at[L, 1, :].set(params['lnf_b'].reshape(D))

    b1 = params['b1'].astype(jnp.float32)                    # (L, 1, F)
    return mats, vec, b1


if __name__ == "__main__":
    key = jax.random.PRNGKey(0)
    pk, xk = jax.random.split(key)
    params = init_params(pk)
    mats, vec, b1 = pack_params(params)
    src = jax.random.normal(xk, (SEQ, BATCH, D_MODEL), jnp.float32)

    out, A = transformer_forward(src, mats, vec, b1)
    jax.block_until_ready((out, A))
    assert out.shape == (SEQ, BATCH, D_MODEL) and A.shape == (BATCH, SEQ, SEQ)
    assert bool(jnp.isfinite(out).all()) and bool(jnp.isfinite(A).all())
    print("KERNEL_OK")
</pallas_src>

<mosaic_0001>
module attributes {stable_mosaic.version = 11 : i64} {
  func.func @transformer_kernel(%arg0: memref<2x8x32xf32, #tpu.memory_space<vmem>>, %arg1: memref<2x256x32xf32, #tpu.memory_space<vmem>>, %arg2: memref<3x20x32xf32, #tpu.memory_space<vmem>>, %arg3: memref<2x1x64xf32, #tpu.memory_space<vmem>>, %arg4: memref<2x8x32xf32, #tpu.memory_space<vmem>>, %arg5: memref<2x8x8xf32, #tpu.memory_space<vmem>>) attributes {dimension_semantics = [], scalar_prefetch = 0 : i64, scratch_operands = 0 : i64, tpu.core_type = #tpu.core_type<tc>} {
    %c0 = arith.constant 0 : index
    %c0_0 = arith.constant 0 : index
    %c0_1 = arith.constant 0 : index
    %0 = vector.load %arg0[%c0, %c0_0, %c0_1] : memref<2x8x32xf32, #tpu.memory_space<vmem>>, vector<2x8x32xf32>
    %1 = vector.shape_cast %0 : vector<2x8x32xf32> to vector<16x32xf32>
    %c0_2 = arith.constant 0 : index
    %c0_3 = arith.constant 0 : index
    %c0_4 = arith.constant 0 : index
    %2 = vector.load %arg2[%c0_2, %c0_3, %c0_4] : memref<3x20x32xf32, #tpu.memory_space<vmem>>, vector<1x1x32xf32>
    %3 = vector.shape_cast %2 : vector<1x1x32xf32> to vector<1x32xf32>
    %c0_5 = arith.constant 0 : index
    %c1 = arith.constant 1 : index
    %c0_6 = arith.constant 0 : index
    %4 = vector.load %arg2[%c0_5, %c1, %c0_6] : memref<3x20x32xf32, #tpu.memory_space<vmem>>, vector<1x1x32xf32>
    %5 = vector.shape_cast %4 : vector<1x1x32xf32> to vector<1x32xf32>
    %c0_7 = arith.constant 0 : index
    %c2 = arith.constant 2 : index
    %c0_8 = arith.constant 0 : index
    %6 = vector.load %arg2[%c0_7, %c2, %c0_8] : memref<3x20x32xf32, #tpu.memory_space<vmem>>, vector<1x1x32xf32>
    %7 = vector.shape_cast %6 : vector<1x1x32xf32> to vector<1x32xf32>
    %c0_9 = arith.constant 0 : index
    %c3 = arith.constant 3 : index
    %c0_10 = arith.constant 0 : index
    %8 = vector.load %arg2[%c0_9, %c3, %c0_10] : memref<3x20x32xf32, #tpu.memory_space<vmem>>, vector<1x1x32xf32>
    %9 = vector.shape_cast %8 : vector<1x1x32xf32> to vector<1x32xf32>
    %c0_11 = arith.constant 0 : index
    %c4 = arith.constant 4 : index
    %c0_12 = arith.constant 0 : index
    %10 = vector.load %arg2[%c0_11, %c4, %c0_12] : memref<3x20x32xf32, #tpu.memory_space<vmem>>, vector<1x1x32xf32>
    %11 = vector.shape_cast %10 : vector<1x1x32xf32> to vector<1x32xf32>
    %c0_13 = arith.constant 0 : index
    %c5 = arith.constant 5 : index
    %c0_14 = arith.constant 0 : index
    %12 = vector.load %arg2[%c0_13, %c5, %c0_14] : memref<3x20x32xf32, #tpu.memory_space<vmem>>, vector<1x1x32xf32>
    %13 = vector.shape_cast %12 : vector<1x1x32xf32> to vector<1x32xf32>
    %c0_15 = arith.constant 0 : index
    %c8 = arith.constant 8 : index
    %c0_16 = arith.constant 0 : index
    %14 = vector.load %arg2[%c0_15, %c8, %c0_16] : memref<3x20x32xf32, #tpu.memory_space<vmem>>, vector<1x12x8xf32>
    %15 = vector.shape_cast %14 : vector<1x12x8xf32> to vector<12x8xf32>
    %16 = vector.shape_cast %15 : vector<12x8xf32> to vector<12x1x8xf32>
    %c0_17 = arith.constant 0 : index
    %c0_18 = arith.constant 0 : index
    %c0_19 = arith.constant 0 : index
    %17 = vector.load %arg3[%c0_17, %c0_18, %c0_19] : memref<2x1x64xf32, #tpu.memory_space<vmem>>, vector<1x1x64xf32>
    %18 = vector.shape_cast %17 : vector<1x1x64xf32> to vector<1x64xf32>
    %c0_20 = arith.constant 0 : index
    %c0_21 = arith.constant 0 : index
    %c0_22 = arith.constant 0 : index
    %19 = vector.load %arg1[%c0_20, %c0_21, %c0_22] : memref<2x256x32xf32, #tpu.memory_space<vmem>>, vector<1x96x32xf32>
    %20 = vector.shape_cast %19 : vector<1x96x32xf32> to vector<96x32xf32>
    %c0_23 = arith.constant 0 : index
    %c96 = arith.constant 96 : index
    %c0_24 = arith.constant 0 : index
    %21 = vector.load %arg1[%c0_23, %c96, %c0_24] : memref<2x256x32xf32, #tpu.memory_space<vmem>>, vector<1x32x32xf32>
    %22 = vector.shape_cast %21 : vector<1x32x32xf32> to vector<32x32xf32>
    %23 = vector.shape_cast %22 : vector<32x32xf32> to vector<4x8x32xf32>
    %c0_25 = arith.constant 0 : index
    %c128 = arith.constant 128 : index
    %c0_26 = arith.constant 0 : index
    %24 = vector.load %arg1[%c0_25, %c128, %c0_26] : memref<2x256x32xf32, #tpu.memory_space<vmem>>, vector<1x64x32xf32>
    %25 = vector.shape_cast %24 : vector<1x64x32xf32> to vector<64x32xf32>
    %c0_27 = arith.constant 0 : index
    %c192 = arith.constant 192 : index
    %c0_28 = arith.constant 0 : index
    %26 = vector.load %arg1[%c0_27, %c192, %c0_28] : memref<2x256x32xf32, #tpu.memory_space<vmem>>, vector<1x64x32xf32>
    %27 = vector.shape_cast %26 : vector<1x64x32xf32> to vector<64x32xf32>
    %cst = arith.constant dense<0.000000e+00> : vector<16xf32>
    %28 = vector.multi_reduction <add>, %1, %cst [1] : vector<16x32xf32> to vector<16xf32>
    %29 = vector.shape_cast %28 : vector<16xf32> to vector<16x1xf32>
    %cst_29 = arith.constant 3.125000e-02 : f32
    %30 = vector.broadcast %cst_29 : f32 to vector<16x1xf32>
    %31 = arith.mulf %29, %30 : vector<16x1xf32>
    %32 = vector.broadcast %31 : vector<16x1xf32> to vector<16x32xf32>
    %33 = arith.subf %1, %32 : vector<16x32xf32>
    %34 = arith.mulf %33, %33 : vector<16x32xf32>
    %cst_30 = arith.constant dense<0.000000e+00> : vector<16xf32>
    %35 = vector.multi_reduction <add>, %34, %cst_30 [1] : vector<16x32xf32> to vector<16xf32>
    %36 = vector.shape_cast %35 : vector<16xf32> to vector<16x1xf32>
    %cst_31 = arith.constant 3.125000e-02 : f32
    %37 = vector.broadcast %cst_31 : f32 to vector<16x1xf32>
    %38 = arith.mulf %36, %37 : vector<16x1xf32>
    %cst_32 = arith.constant 9.99999974E-6 : f32
    %39 = vector.broadcast %cst_32 : f32 to vector<16x1xf32>
    %40 = arith.addf %38, %39 : vector<16x1xf32>
    %41 = math.rsqrt %40 : vector<16x1xf32>
    %42 = vector.broadcast %41 : vector<16x1xf32> to vector<16x32xf32>
    %43 = arith.mulf %33, %42 : vector<16x32xf32>
    %44 = vector.broadcast %3 : vector<1x32xf32> to vector<16x32xf32>
    %45 = arith.mulf %43, %44 : vector<16x32xf32>
    %46 = vector.broadcast %5 : vector<1x32xf32> to vector<16x32xf32>
    %47 = arith.addf %45, %46 : vector<16x32xf32>
    "tpu.trace_start"() <{level = 10 : i32, message = "ed,rd->er"}> : () -> ()
    %cst_33 = arith.constant dense<0.000000e+00> : vector<96x16xf32>
    %48 = tpu.matmul %20, %47, %cst_33 {dimension_numbers = #tpu.dot_dimension_numbers<[1], [1], [0], [0], [0, 0, 1, 0], [], []>} : vector<96x32xf32>, vector<16x32xf32>, vector<96x16xf32> -> vector<96x16xf32>
    "tpu.trace_stop"() : () -> ()
    %49 = vector.shape_cast %48 : vector<96x16xf32> to vector<12x8x16xf32>
    %50 = tpu.transpose %49, [0, 2, 1] : vector<12x8x16xf32> -> vector<12x16x8xf32>
    %51 = vector.broadcast %16 : vector<12x1x8xf32> to vector<12x16x8xf32>
    %52 = arith.addf %50, %51 : vector<12x16x8xf32>
    %53 = vector.extract_strided_slice %52 {offsets = [0, 0, 0], sizes = [4, 16, 8], strides = [1, 1, 1]} : vector<12x16x8xf32> to vector<4x16x8xf32>
    %54 = vector.shape_cast %53 : vector<4x16x8xf32> to vector<8x8x8xf32>
    %55 = vector.extract_strided_slice %52 {offsets = [4, 0, 0], sizes = [4, 16, 8], strides = [1, 1, 1]} : vector<12x16x8xf32> to vector<4x16x8xf32>
    %56 = vector.shape_cast %55 : vector<4x16x8xf32> to vector<8x8x8xf32>
    %57 = vector.extract_strided_slice %52 {offsets = [8, 0, 0], sizes = [4, 16, 8], strides = [1, 1, 1]} : vector<12x16x8xf32> to vector<4x16x8xf32>
    %58 = vector.shape_cast %57 : vector<4x16x8xf32> to vector<8x8x8xf32>
    "tpu.trace_start"() <{level = 10 : i32, message = "nqd,nkd->nqk"}> : () -> ()
    %cst_34 = arith.constant dense<0.000000e+00> : vector<8x8x8xf32>
    %59 = tpu.matmul %54, %56, %cst_34 {dimension_numbers = #tpu.dot_dimension_numbers<[2], [2], [1], [1], [0, 0, 0, 1, 1, 1], [0], [0]>} : vector<8x8x8xf32>, vector<8x8x8xf32>, vector<8x8x8xf32> -> vector<8x8x8xf32>
    "tpu.trace_stop"() : () -> ()
    %cst_35 = arith.constant dense<0xFF800000> : vector<8x8xf32>
    %60 = vector.multi_reduction <maximumf>, %59, %cst_35 [2] : vector<8x8x8xf32> to vector<8x8xf32>
    %61 = vector.shape_cast %60 : vector<8x8xf32> to vector<8x8x1xf32>
    %62 = vector.broadcast %61 : vector<8x8x1xf32> to vector<8x8x8xf32>
    %63 = arith.subf %59, %62 : vector<8x8x8xf32>
    %64 = math.exp %63 : vector<8x8x8xf32>
    %cst_36 = arith.constant dense<0.000000e+00> : vector<8x8xf32>
    %65 = vector.multi_reduction <add>, %64, %cst_36 [2] : vector<8x8x8xf32> to vector<8x8xf32>
    %66 = vector.shape_cast %65 : vector<8x8xf32> to vector<8x8x1xf32>
    %67 = vector.broadcast %66 : vector<8x8x1xf32> to vector<8x8x8xf32>
    %68 = arith.divf %64, %67 : vector<8x8x8xf32>
    "tpu.trace_start"() <{level = 10 : i32, message = "nqk,nkd->nqd"}> : () -> ()
    %cst_37 = arith.constant dense<0.000000e+00> : vector<8x8x8xf32>
    %69 = tpu.matmul %68, %58, %cst_37 {dimension_numbers = #tpu.dot_dimension_numbers<[2], [1], [1], [2], [0, 0, 0, 1, 1, 2], [0], [0]>} : vector<8x8x8xf32>, vector<8x8x8xf32>, vector<8x8x8xf32> -> vector<8x8x8xf32>
    "tpu.trace_stop"() : () -> ()
    %70 = vector.shape_cast %69 : vector<8x8x8xf32> to vector<4x16x8xf32>
    "tpu.trace_start"() <{level = 10 : i32, message = "hrj,hjd->hrd"}> : () -> ()
    %cst_38 = arith.constant dense<0.000000e+00> : vector<4x16x32xf32>
    %71 = tpu.matmul %70, %23, %cst_38 {dimension_numbers = #tpu.dot_dimension_numbers<[2], [1], [1], [2], [0, 0, 0, 1, 1, 2], [0], [0]>} : vector<4x16x8xf32>, vector<4x8x32xf32>, vector<4x16x32xf32> -> vector<4x16x32xf32>
    "tpu.trace_stop"() : () -> ()
    %cst_39 = arith.constant dense<0.000000e+00> : vector<16x32xf32>
    %72 = vector.multi_reduction <add>, %71, %cst_39 [0] : vector<4x16x32xf32> to vector<16x32xf32>
    %73 = arith.addf %1, %72 : vector<16x32xf32>
    %74 = vector.broadcast %11 : vector<1x32xf32> to vector<16x32xf32>
    %75 = arith.addf %73, %74 : vector<16x32xf32>
    %cst_40 = arith.constant dense<0.000000e+00> : vector<16xf32>
    %76 = vector.multi_reduction <add>, %75, %cst_40 [1] : vector<16x32xf32> to vector<16xf32>
    %77 = vector.shape_cast %76 : vector<16xf32> to vector<16x1xf32>
    %cst_41 = arith.constant 3.125000e-02 : f32
    %78 = vector.broadcast %cst_41 : f32 to vector<16x1xf32>
    %79 = arith.mulf %77, %78 : vector<16x1xf32>
    %80 = vector.broadcast %79 : vector<16x1xf32> to vector<16x32xf32>
    %81 = arith.subf %75, %80 : vector<16x32xf32>
    %82 = arith.mulf %81, %81 : vector<16x32xf32>
    %cst_42 = arith.constant dense<0.000000e+00> : vector<16xf32>
    %83 = vector.multi_reduction <add>, %82, %cst_42 [1] : vector<16x32xf32> to vector<16xf32>
    %84 = vector.shape_cast %83 : vector<16xf32> to vector<16x1xf32>
    %cst_43 = arith.constant 3.125000e-02 : f32
    %85 = vector.broadcast %cst_43 : f32 to vector<16x1xf32>
    %86 = arith.mulf %84, %85 : vector<16x1xf32>
    %cst_44 = arith.constant 9.99999974E-6 : f32
    %87 = vector.broadcast %cst_44 : f32 to vector<16x1xf32>
    %88 = arith.addf %86, %87 : vector<16x1xf32>
    %89 = math.rsqrt %88 : vector<16x1xf32>
    %90 = vector.broadcast %89 : vector<16x1xf32> to vector<16x32xf32>
    %91 = arith.mulf %81, %90 : vector<16x32xf32>
    %92 = vector.broadcast %7 : vector<1x32xf32> to vector<16x32xf32>
    %93 = arith.mulf %91, %92 : vector<16x32xf32>
    %94 = vector.broadcast %9 : vector<1x32xf32> to vector<16x32xf32>
    %95 = arith.addf %93, %94 : vector<16x32xf32>
    "tpu.trace_start"() <{level = 10 : i32, message = "rd,fd->rf"}> : () -> ()
    %cst_45 = arith.constant dense<0.000000e+00> : vector<16x64xf32>
    %96 = tpu.matmul %95, %25, %cst_45 {dimension_numbers = #tpu.dot_dimension_numbers<[1], [1], [0], [0], [0, 0, 1, 0], [], []>} : vector<16x32xf32>, vector<64x32xf32>, vector<16x64xf32> -> vector<16x64xf32>
    "tpu.trace_stop"() : () -> ()
    %97 = vector.broadcast %18 : vector<1x64xf32> to vector<16x64xf32>
    %98 = arith.addf %96, %97 : vector<16x64xf32>
    %cst_46 = arith.constant 0.000000e+00 : f32
    %99 = vector.broadcast %cst_46 : f32 to vector<16x64xf32>
    %100 = arith.maximumf %98, %99 : vector<16x64xf32>
    %cst_47 = arith.constant dense<0.000000e+00> : vector<16x32xf32>
    %101 = tpu.matmul %100, %27, %cst_47 {dimension_numbers = #tpu.dot_dimension_numbers<[1], [0], [0], [1], [0, 0, 1, 1], [], []>} : vector<16x64xf32>, vector<64x32xf32>, vector<16x32xf32> -> vector<16x32xf32>
    %102 = arith.addf %75, %101 : vector<16x32xf32>
    %103 = vector.broadcast %13 : vector<1x32xf32> to vector<16x32xf32>
    %104 = arith.addf %102, %103 : vector<16x32xf32>
    %c1_48 = arith.constant 1 : index
    %c0_49 = arith.constant 0 : index
    %c0_50 = arith.constant 0 : index
    %105 = vector.load %arg2[%c1_48, %c0_49, %c0_50] : memref<3x20x32xf32, #tpu.memory_space<vmem>>, vector<1x1x32xf32>
    %106 = vector.shape_cast %105 : vector<1x1x32xf32> to vector<1x32xf32>
    %c1_51 = arith.constant 1 : index
    %c1_52 = arith.constant 1 : index
    %c0_53 = arith.constant 0 : index
    %107 = vector.load %arg2[%c1_51, %c1_52, %c0_53] : memref<3x20x32xf32, #tpu.memory_space<vmem>>, vector<1x1x32xf32>
    %108 = vector.shape_cast %107 : vector<1x1x32xf32> to vector<1x32xf32>
    %c1_54 = arith.constant 1 : index
    %c2_55 = arith.constant 2 : index
    %c0_56 = arith.constant 0 : index
    %109 = vector.load %arg2[%c1_54, %c2_55, %c0_56] : memref<3x20x32xf32, #tpu.memory_space<vmem>>, vector<1x1x32xf32>
    %110 = vector.shape_cast %109 : vector<1x1x32xf32> to vector<1x32xf32>
    %c1_57 = arith.constant 1 : index
    %c3_58 = arith.constant 3 : index
    %c0_59 = arith.constant 0 : index
    %111 = vector.load %arg2[%c1_57, %c3_58, %c0_59] : memref<3x20x32xf32, #tpu.memory_space<vmem>>, vector<1x1x32xf32>
    %112 = vector.shape_cast %111 : vector<1x1x32xf32> to vector<1x32xf32>
    %c1_60 = arith.constant 1 : index
    %c4_61 = arith.constant 4 : index
    %c0_62 = arith.constant 0 : index
    %113 = vector.load %arg2[%c1_60, %c4_61, %c0_62] : memref<3x20x32xf32, #tpu.memory_space<vmem>>, vector<1x1x32xf32>
    %114 = vector.shape_cast %113 : vector<1x1x32xf32> to vector<1x32xf32>
    %c1_63 = arith.constant 1 : index
    %c5_64 = arith.constant 5 : index
    %c0_65 = arith.constant 0 : index
    %115 = vector.load %arg2[%c1_63, %c5_64, %c0_65] : memref<3x20x32xf32, #tpu.memory_space<vmem>>, vector<1x1x32xf32>
    %116 = vector.shape_cast %115 : vector<1x1x32xf32> to vector<1x32xf32>
    %c1_66 = arith.constant 1 : index
    %c8_67 = arith.constant 8 : index
    %c0_68 = arith.constant 0 : index
    %117 = vector.load %arg2[%c1_66, %c8_67, %c0_68] : memref<3x20x32xf32, #tpu.memory_space<vmem>>, vector<1x12x8xf32>
    %118 = vector.shape_cast %117 : vector<1x12x8xf32> to vector<12x8xf32>
    %119 = vector.shape_cast %118 : vector<12x8xf32> to vector<12x1x8xf32>
    %c1_69 = arith.constant 1 : index
    %c0_70 = arith.constant 0 : index
    %c0_71 = arith.constant 0 : index
    %120 = vector.load %arg3[%c1_69, %c0_70, %c0_71] : memref<2x1x64xf32, #tpu.memory_space<vmem>>, vector<1x1x64xf32>
    %121 = vector.shape_cast %120 : vector<1x1x64xf32> to vector<1x64xf32>
    %c1_72 = arith.constant 1 : index
    %c0_73 = arith.constant 0 : index
    %c0_74 = arith.constant 0 : index
    %122 = vector.load %arg1[%c1_72, %c0_73, %c0_74] : memref<2x256x32xf32, #tpu.memory_space<vmem>>, vector<1x96x32xf32>
    %123 = vector.shape_cast %122 : vector<1x96x32xf32> to vector<96x32xf32>
    %c1_75 = arith.constant 1 : index
    %c96_76 = arith.constant 96 : index
    %c0_77 = arith.constant 0 : index
    %124 = vector.load %arg1[%c1_75, %c96_76, %c0_77] : memref<2x256x32xf32, #tpu.memory_space<vmem>>, vector<1x32x32xf32>
    %125 = vector.shape_cast %124 : vector<1x32x32xf32> to vector<32x32xf32>
    %126 = vector.shape_cast %125 : vector<32x32xf32> to vector<4x8x32xf32>
    %c1_78 = arith.constant 1 : index
    %c128_79 = arith.constant 128 : index
    %c0_80 = arith.constant 0 : index
    %127 = vector.load %arg1[%c1_78, %c128_79, %c0_80] : memref<2x256x32xf32, #tpu.memory_space<vmem>>, vector<1x64x32xf32>
    %128 = vector.shape_cast %127 : vector<1x64x32xf32> to vector<64x32xf32>
    %c1_81 = arith.constant 1 : index
    %c192_82 = arith.constant 192 : index
    %c0_83 = arith.constant 0 : index
    %129 = vector.load %arg1[%c1_81, %c192_82, %c0_83] : memref<2x256x32xf32, #tpu.memory_space<vmem>>, vector<1x64x32xf32>
    %130 = vector.shape_cast %129 : vector<1x64x32xf32> to vector<64x32xf32>
    %cst_84 = arith.constant dense<0.000000e+00> : vector<16xf32>
    %131 = vector.multi_reduction <add>, %104, %cst_84 [1] : vector<16x32xf32> to vector<16xf32>
    %132 = vector.shape_cast %131 : vector<16xf32> to vector<16x1xf32>
    %cst_85 = arith.constant 3.125000e-02 : f32
    %133 = vector.broadcast %cst_85 : f32 to vector<16x1xf32>
    %134 = arith.mulf %132, %133 : vector<16x1xf32>
    %135 = vector.broadcast %134 : vector<16x1xf32> to vector<16x32xf32>
    %136 = arith.subf %104, %135 : vector<16x32xf32>
    %137 = arith.mulf %136, %136 : vector<16x32xf32>
    %cst_86 = arith.constant dense<0.000000e+00> : vector<16xf32>
    %138 = vector.multi_reduction <add>, %137, %cst_86 [1] : vector<16x32xf32> to vector<16xf32>
    %139 = vector.shape_cast %138 : vector<16xf32> to vector<16x1xf32>
    %cst_87 = arith.constant 3.125000e-02 : f32
    %140 = vector.broadcast %cst_87 : f32 to vector<16x1xf32>
    %141 = arith.mulf %139, %140 : vector<16x1xf32>
    %cst_88 = arith.constant 9.99999974E-6 : f32
    %142 = vector.broadcast %cst_88 : f32 to vector<16x1xf32>
    %143 = arith.addf %141, %142 : vector<16x1xf32>
    %144 = math.rsqrt %143 : vector<16x1xf32>
    %145 = vector.broadcast %144 : vector<16x1xf32> to vector<16x32xf32>
    %146 = arith.mulf %136, %145 : vector<16x32xf32>
    %147 = vector.broadcast %106 : vector<1x32xf32> to vector<16x32xf32>
    %148 = arith.mulf %146, %147 : vector<16x32xf32>
    %149 = vector.broadcast %108 : vector<1x32xf32> to vector<16x32xf32>
    %150 = arith.addf %148, %149 : vector<16x32xf32>
    "tpu.trace_start"() <{level = 10 : i32, message = "ed,rd->er"}> : () -> ()
    %cst_89 = arith.constant dense<0.000000e+00> : vector<96x16xf32>
    %151 = tpu.matmul %123, %150, %cst_89 {dimension_numbers = #tpu.dot_dimension_numbers<[1], [1], [0], [0], [0, 0, 1, 0], [], []>} : vector<96x32xf32>, vector<16x32xf32>, vector<96x16xf32> -> vector<96x16xf32>
    "tpu.trace_stop"() : () -> ()
    %152 = vector.shape_cast %151 : vector<96x16xf32> to vector<12x8x16xf32>
    %153 = tpu.transpose %152, [0, 2, 1] : vector<12x8x16xf32> -> vector<12x16x8xf32>
    %154 = vector.broadcast %119 : vector<12x1x8xf32> to vector<12x16x8xf32>
    %155 = arith.addf %153, %154 : vector<12x16x8xf32>
    %156 = vector.extract_strided_slice %155 {offsets = [0, 0, 0], sizes = [4, 16, 8], strides = [1, 1, 1]} : vector<12x16x8xf32> to vector<4x16x8xf32>
    %157 = vector.shape_cast %156 : vector<4x16x8xf32> to vector<8x8x8xf32>
    %158 = vector.extract_strided_slice %155 {offsets = [4, 0, 0], sizes = [4, 16, 8], strides = [1, 1, 1]} : vector<12x16x8xf32> to vector<4x16x8xf32>
    %159 = vector.shape_cast %158 : vector<4x16x8xf32> to vector<8x8x8xf32>
    %160 = vector.extract_strided_slice %155 {offsets = [8, 0, 0], sizes = [4, 16, 8], strides = [1, 1, 1]} : vector<12x16x8xf32> to vector<4x16x8xf32>
    %161 = vector.shape_cast %160 : vector<4x16x8xf32> to vector<8x8x8xf32>
    "tpu.trace_start"() <{level = 10 : i32, message = "nqd,nkd->nqk"}> : () -> ()
    %cst_90 = arith.constant dense<0.000000e+00> : vector<8x8x8xf32>
    %162 = tpu.matmul %157, %159, %cst_90 {dimension_numbers = #tpu.dot_dimension_numbers<[2], [2], [1], [1], [0, 0, 0, 1, 1, 1], [0], [0]>} : vector<8x8x8xf32>, vector<8x8x8xf32>, vector<8x8x8xf32> -> vector<8x8x8xf32>
    "tpu.trace_stop"() : () -> ()
    %cst_91 = arith.constant dense<0xFF800000> : vector<8x8xf32>
    %163 = vector.multi_reduction <maximumf>, %162, %cst_91 [2] : vector<8x8x8xf32> to vector<8x8xf32>
    %164 = vector.shape_cast %163 : vector<8x8xf32> to vector<8x8x1xf32>
    %165 = vector.broadcast %164 : vector<8x8x1xf32> to vector<8x8x8xf32>
    %166 = arith.subf %162, %165 : vector<8x8x8xf32>
    %167 = math.exp %166 : vector<8x8x8xf32>
    %cst_92 = arith.constant dense<0.000000e+00> : vector<8x8xf32>
    %168 = vector.multi_reduction <add>, %167, %cst_92 [2] : vector<8x8x8xf32> to vector<8x8xf32>
    %169 = vector.shape_cast %168 : vector<8x8xf32> to vector<8x8x1xf32>
    %170 = vector.broadcast %169 : vector<8x8x1xf32> to vector<8x8x8xf32>
    %171 = arith.divf %167, %170 : vector<8x8x8xf32>
    "tpu.trace_start"() <{level = 10 : i32, message = "nqk,nkd->nqd"}> : () -> ()
    %cst_93 = arith.constant dense<0.000000e+00> : vector<8x8x8xf32>
    %172 = tpu.matmul %171, %161, %cst_93 {dimension_numbers = #tpu.dot_dimension_numbers<[2], [1], [1], [2], [0, 0, 0, 1, 1, 2], [0], [0]>} : vector<8x8x8xf32>, vector<8x8x8xf32>, vector<8x8x8xf32> -> vector<8x8x8xf32>
    "tpu.trace_stop"() : () -> ()
    %173 = vector.shape_cast %172 : vector<8x8x8xf32> to vector<4x16x8xf32>
    "tpu.trace_start"() <{level = 10 : i32, message = "hrj,hjd->hrd"}> : () -> ()
    %cst_94 = arith.constant dense<0.000000e+00> : vector<4x16x32xf32>
    %174 = tpu.matmul %173, %126, %cst_94 {dimension_numbers = #tpu.dot_dimension_numbers<[2], [1], [1], [2], [0, 0, 0, 1, 1, 2], [0], [0]>} : vector<4x16x8xf32>, vector<4x8x32xf32>, vector<4x16x32xf32> -> vector<4x16x32xf32>
    "tpu.trace_stop"() : () -> ()
    %cst_95 = arith.constant dense<0.000000e+00> : vector<16x32xf32>
    %175 = vector.multi_reduction <add>, %174, %cst_95 [0] : vector<4x16x32xf32> to vector<16x32xf32>
    %176 = arith.addf %104, %175 : vector<16x32xf32>
    %177 = vector.broadcast %114 : vector<1x32xf32> to vector<16x32xf32>
    %178 = arith.addf %176, %177 : vector<16x32xf32>
    %cst_96 = arith.constant dense<0.000000e+00> : vector<16xf32>
    %179 = vector.multi_reduction <add>, %178, %cst_96 [1] : vector<16x32xf32> to vector<16xf32>
    %180 = vector.shape_cast %179 : vector<16xf32> to vector<16x1xf32>
    %cst_97 = arith.constant 3.125000e-02 : f32
    %181 = vector.broadcast %cst_97 : f32 to vector<16x1xf32>
    %182 = arith.mulf %180, %181 : vector<16x1xf32>
    %183 = vector.broadcast %182 : vector<16x1xf32> to vector<16x32xf32>
    %184 = arith.subf %178, %183 : vector<16x32xf32>
    %185 = arith.mulf %184, %184 : vector<16x32xf32>
    %cst_98 = arith.constant dense<0.000000e+00> : vector<16xf32>
    %186 = vector.multi_reduction <add>, %185, %cst_98 [1] : vector<16x32xf32> to vector<16xf32>
    %187 = vector.shape_cast %186 : vector<16xf32> to vector<16x1xf32>
    %cst_99 = arith.constant 3.125000e-02 : f32
    %188 = vector.broadcast %cst_99 : f32 to vector<16x1xf32>
    %189 = arith.mulf %187, %188 : vector<16x1xf32>
    %cst_100 = arith.constant 9.99999974E-6 : f32
    %190 = vector.broadcast %cst_100 : f32 to vector<16x1xf32>
    %191 = arith.addf %189, %190 : vector<16x1xf32>
    %192 = math.rsqrt %191 : vector<16x1xf32>
    %193 = vector.broadcast %192 : vector<16x1xf32> to vector<16x32xf32>
    %194 = arith.mulf %184, %193 : vector<16x32xf32>
    %195 = vector.broadcast %110 : vector<1x32xf32> to vector<16x32xf32>
    %196 = arith.mulf %194, %195 : vector<16x32xf32>
    %197 = vector.broadcast %112 : vector<1x32xf32> to vector<16x32xf32>
    %198 = arith.addf %196, %197 : vector<16x32xf32>
    "tpu.trace_start"() <{level = 10 : i32, message = "rd,fd->rf"}> : () -> ()
    %cst_101 = arith.constant dense<0.000000e+00> : vector<16x64xf32>
    %199 = tpu.matmul %198, %128, %cst_101 {dimension_numbers = #tpu.dot_dimension_numbers<[1], [1], [0], [0], [0, 0, 1, 0], [], []>} : vector<16x32xf32>, vector<64x32xf32>, vector<16x64xf32> -> vector<16x64xf32>
    "tpu.trace_stop"() : () -> ()
    %200 = vector.broadcast %121 : vector<1x64xf32> to vector<16x64xf32>
    %201 = arith.addf %199, %200 : vector<16x64xf32>
    %cst_102 = arith.constant 0.000000e+00 : f32
    %202 = vector.broadcast %cst_102 : f32 to vector<16x64xf32>
    %203 = arith.maximumf %201, %202 : vector<16x64xf32>
    %cst_103 = arith.constant dense<0.000000e+00> : vector<16x32xf32>
    %204 = tpu.matmul %203, %130, %cst_103 {dimension_numbers = #tpu.dot_dimension_numbers<[1], [0], [0], [1], [0, 0, 1, 1], [], []>} : vector<16x64xf32>, vector<64x32xf32>, vector<16x32xf32> -> vector<16x32xf32>
    %205 = arith.addf %178, %204 : vector<16x32xf32>
    %206 = vector.broadcast %116 : vector<1x32xf32> to vector<16x32xf32>
    %207 = arith.addf %205, %206 : vector<16x32xf32>
    %208 = vector.shape_cast %171 : vector<8x8x8xf32> to vector<4x2x8x8xf32>
    %cst_104 = arith.constant dense<0.000000e+00> : vector<2x8x8xf32>
    %209 = vector.multi_reduction <add>, %208, %cst_104 [0] : vector<4x2x8x8xf32> to vector<2x8x8xf32>
    %cst_105 = arith.constant 2.500000e-01 : f32
    %210 = vector.broadcast %cst_105 : f32 to vector<2x8x8xf32>
    %211 = arith.mulf %209, %210 : vector<2x8x8xf32>
    %c2_106 = arith.constant 2 : index
    %c0_107 = arith.constant 0 : index
    %c0_108 = arith.constant 0 : index
    %212 = vector.load %arg2[%c2_106, %c0_107, %c0_108] : memref<3x20x32xf32, #tpu.memory_space<vmem>>, vector<1x1x32xf32>
    %213 = vector.shape_cast %212 : vector<1x1x32xf32> to vector<1x32xf32>
    %c2_109 = arith.constant 2 : index
    %c1_110 = arith.constant 1 : index
    %c0_111 = arith.constant 0 : index
    %214 = vector.load %arg2[%c2_109, %c1_110, %c0_111] : memref<3x20x32xf32, #tpu.memory_space<vmem>>, vector<1x1x32xf32>
    %215 = vector.shape_cast %214 : vector<1x1x32xf32> to vector<1x32xf32>
    %cst_112 = arith.constant dense<0.000000e+00> : vector<16xf32>
    %216 = vector.multi_reduction <add>, %207, %cst_112 [1] : vector<16x32xf32> to vector<16xf32>
    %217 = vector.shape_cast %216 : vector<16xf32> to vector<16x1xf32>
    %cst_113 = arith.constant 3.125000e-02 : f32
    %218 = vector.broadcast %cst_113 : f32 to vector<16x1xf32>
    %219 = arith.mulf %217, %218 : vector<16x1xf32>
    %220 = vector.broadcast %219 : vector<16x1xf32> to vector<16x32xf32>
    %221 = arith.subf %207, %220 : vector<16x32xf32>
    %222 = arith.mulf %221, %221 : vector<16x32xf32>
    %cst_114 = arith.constant dense<0.000000e+00> : vector<16xf32>
    %223 = vector.multi_reduction <add>, %222, %cst_114 [1] : vector<16x32xf32> to vector<16xf32>
    %224 = vector.shape_cast %223 : vector<16xf32> to vector<16x1xf32>
    %cst_115 = arith.constant 3.125000e-02 : f32
    %225 = vector.broadcast %cst_115 : f32 to vector<16x1xf32>
    %226 = arith.mulf %224, %225 : vector<16x1xf32>
    %cst_116 = arith.constant 9.99999974E-6 : f32
    %227 = vector.broadcast %cst_116 : f32 to vector<16x1xf32>
    %228 = arith.addf %226, %227 : vector<16x1xf32>
    %229 = math.rsqrt %228 : vector<16x1xf32>
    %230 = vector.broadcast %229 : vector<16x1xf32> to vector<16x32xf32>
    %231 = arith.mulf %221, %230 : vector<16x32xf32>
    %232 = vector.broadcast %213 : vector<1x32xf32> to vector<16x32xf32>
    %233 = arith.mulf %231, %232 : vector<16x32xf32>
    %234 = vector.broadcast %215 : vector<1x32xf32> to vector<16x32xf32>
    %235 = arith.addf %233, %234 : vector<16x32xf32>
    %236 = vector.shape_cast %235 : vector<16x32xf32> to vector<2x8x32xf32>
    %c0_117 = arith.constant 0 : index
    %c0_118 = arith.constant 0 : index
    %c0_119 = arith.constant 0 : index
    %237 = vector.load %arg4[%c0_117, %c0_118, %c0_119] : memref<2x8x32xf32, #tpu.memory_space<vmem>>, vector<2x8x32xf32>
    tpu.vector_store %arg4[%c0_117, %c0_118, %c0_119], %236 {strides = array<i32>} : memref<2x8x32xf32, #tpu.memory_space<vmem>>, vector<2x8x32xf32>,
    %c0_120 = arith.constant 0 : index
    %c0_121 = arith.constant 0 : index
    %c0_122 = arith.constant 0 : index
    %238 = vector.load %arg5[%c0_120, %c0_121, %c0_122] : memref<2x8x8xf32, #tpu.memory_space<vmem>>, vector<2x8x8xf32>
    tpu.vector_store %arg5[%c0_120, %c0_121, %c0_122], %211 {strides = array<i32>} : memref<2x8x8xf32, #tpu.memory_space<vmem>>, vector<2x8x8xf32>,
    return
  }
}

</mosaic_0001>

<bundles_post_ra>
// kernel: transformer_forward.1
= control target key start
LH: loop header
LB: loop body
LE: loop exit
PB: predicated region body
PF: predicated region fallthrough
CT: control target
= control target key end

     0   :  { %vm138_vm0 = vcmask 261120   ;;  %s7082_s0 = inlined_call_operand.vmem [shape: f32[2,8,32], index: 0, kind: input, shape index: {}]   ;;  %s7083_s1 = inlined_call_operand.vmem [shape: f32[2,256,32], index: 1, kind: input, shape index: {}]   ;;  %s7084_s2 = inlined_call_operand.vmem [shape: f32[3,20,32], index: 2, kind: input, shape index: {}]   ;;  %s7085_s3 = inlined_call_operand.vmem [shape: f32[2,1,64], index: 3, kind: input, shape index: {}]   ;;  %s7086_s4 = inlined_call_operand.vmem [shape: f32[2,8,32], index: 4, kind: output, shape index: {0}]   ;;  %s7087_s5 = inlined_call_operand.hbm [shape: f32[2,8,8], index: 5, kind: output, shape index: {1}]  }
   0x1   :  { %v6321_v0 = vld [vmem:[%s7082_s0] sm:$0xff]  ;;  %v6326_v1 = vld [vmem:[%s7082_s0 + $0x8] sm:$0xff] }
   0x2   :  { %11 = vsyncpa [#allocation3], 0  ;;  %v139_v2 = vsel %vm138_vm0, %v6321_v0, 0.0  ;;  %v142_v3 = vsel %vm138_vm0, %v6326_v1, 0.0  ;;  %v106_v14 = vld [vmem:[%s7083_s1] sm:$0xff]  ;;  %v107_v33 = vld [vmem:[%s7083_s1 + $0x8] sm:$0xff]  ;;  %v36_v55 = vlaneseq }
   0x3   :  { %140 = vadd.xlane.f32.xlu0 %v139_v2  ;;  %5756 = vmatprep.mubr.msk.f32.mxu0 %vm138_vm0, %v106_v14  ;;  %v5420_v23 = vld [vmem:[%s7084_s2] ss:$0 sm:$0xff]  ;;  %v5421_v27 = vld [vmem:[%s7084_s2 + $0x1] ss:$0 sm:$0xff]  ;;  %vm6348_vm1 = vmpackc.low %vm138_vm0, %vm138_vm0  ;;  %v6282_v49 = vmov 0.0   ;;  %vm6283_vm2 = vmmov 0  }
   0x4   :  { %v108_v34 = vld [vmem:[%s7083_s1 + $0x10] sm:$0xff]  ;;  %v109_v35 = vld [vmem:[%s7083_s1 + $0x18] sm:$0xff]  ;;  %v110_v36 = vld [vmem:[%s7083_s1 + $0x20] sm:$0xff]  ;;  %v6284_v53 = vmov 1966171168   ;;  %v37_v57 = vshrl.u32 %v36_v55, 7 }
   0x5   :  { %v111_v37 = vld [vmem:[%s7083_s1 + $0x28] sm:$0xff]  ;;  %v112_v38 = vld [vmem:[%s7083_s1 + $0x30] sm:$0xff]  ;;  %v113_v39 = vld [vmem:[%s7083_s1 + $0x38] sm:$0xff]  ;;  %v34_v54 = vunpack.c.l.s4 %v6284_v53  ;;  %vm812_vm3 = vcmask 64512   ;;  %vm2590_vm4 = vcmask 523264  }
   0x6   :  { %v116_v46 = vld [vmem:[%s7083_s1 + $0x50] sm:$0xff]  ;;  %v117_v47 = vld [vmem:[%s7083_s1 + $0x58] sm:$0xff]  ;;  %v114_v51 = vld [vmem:[%s7083_s1 + $0x40] sm:$0xff]  ;;  %v6418_v2 = vsub.s32 0, %v37_v57 }
   0x7   :  { %143 = vadd.xlane.f32.xlu0 %v142_v3  ;;  %5771 = vmatprep.mubr.msk.f32.mxu1 %vm138_vm0, %v116_v46  ;;  %v115_v52 = vld [vmem:[%s7083_s1 + $0x48] sm:$0xff]  ;;  %v35_v56 = vunpack.c.0.s8 %v34_v54  ;;  %v5523_v31 = vld [vmem:[%s7083_s1 + $0x1e0] sm:$0xff] }
   0x8   :  { %v28_v58 = vld [vmem:[%s7084_s2 + $0x8] sm:$0xff] }
   0x9   :  { %v32_v59 = vcombine.high %v28_v58, %v28_v58  ;;  %v6413_v60 = vsub.s32 %v35_v56, %v37_v57 }
   0xb   :  { %v46_v61 = vrot.slane %v32_v59, %v6413_v60  ;;  %v39_v62 = vrot.slane %v28_v58, %v6413_v60 }
   0xd   :  { %v62_v63 = vrot.slane %v46_v61, %v6413_v60  ;;  %v55_v3 = vrot.slane %v39_v62, %v6413_v60 }
  0x90   :  { %v141_v4 = vpop.xlane.xlu0 %140 }
  0x91   :  { %v145_v5 = vmul.f32 0.03125, %v141_v4 }
  0x93   :  { %v147_v6 = vsub.f32 %v6321_v0, %v145_v5  ;;  %v747_v5 = vrot.slane %v62_v63, %v6418_v2 }
  0x94   :  { %v144_v7 = vpop.xlane.xlu0 %143 }
  0x95   :  { %v146_v8 = vmul.f32 0.03125, %v144_v7  ;;  %v149_v9 = vmul.f32 %v147_v6, %v147_v6  ;;  %v731_v7 = vrot.slane %v55_v3, %v6418_v2 }
  0x97   :  { %v148_v10 = vsub.f32 %v6326_v1, %v146_v8  ;;  %v151_v11 = vsel %vm138_vm0, %v149_v9, 0.0 }
  0x98   :  { %152 = vadd.xlane.f32.xlu1 %v151_v11 }
  0x99   :  { %v150_v12 = vmul.f32 %v148_v10, %v148_v10 }
  0x9b   :  { %v154_v13 = vsel %vm138_vm0, %v150_v12, 0.0 }
  0x9c   :  { %155 = vadd.xlane.f32.xlu1 %v154_v13 }
 0x125   :  { %v153_v15 = vpop.xlane.xlu1 %152 }
 0x126   :  { %v157_v16 = vmul.f32 0.03125, %v153_v15 }
 0x128   :  { %v159_v17 = vadd.f32 1e-05, %v157_v16 }
 0x129   :  { %v156_v18 = vpop.xlane.xlu1 %155 }
 0x12a   :  { %6174 = vrsqrt.f32 %v159_v17  ;;  %v158_v19 = vmul.f32 0.03125, %v156_v18  ;;  %v47_v17 = vcombine.high %v39_v62, %v39_v62 }
 0x12c   :  { %v160_v20 = vadd.f32 1e-05, %v158_v19 }
 0x12e   :  { %6176 = vrsqrt.f32 %v160_v20 }
 0x134   :  { %v6175_v21 = vpop.eup %6174 }
 0x135   :  { %v163_v22 = vmul.f32 %v6175_v21, %v147_v6  ;;  %v48_v6 = vcombine.high %v46_v61, %v46_v61 }
 0x137   :  { %v169_v26 = vmul.f32 %v5420_v23, %v163_v22  ;;  %v76_v11 = vrot.slane %v48_v6, %v6413_v60  ;;  %v69_v22 = vrot.slane %v47_v17, %v6413_v60 }
 0x138   :  { %v6177_v24 = vpop.eup %6176 }
 0x139   :  { %v164_v25 = vmul.f32 %v6177_v24, %v148_v10  ;;  %v175_v29 = vadd.f32 %v5421_v27, %v169_v26  ;;  %v751_v16 = vrot.slane %v76_v11, %v6418_v2 }
 0x13b   :  { %v170_v28 = vmul.f32 %v5420_v23, %v164_v25  ;;  %v80_v23 = vcombine.high %v76_v11, %v76_v11  ;;  %v78_v25 = vcombine.high %v62_v63, %v62_v63 }
 0x13d   :  { %v176_v30 = vadd.f32 %v5421_v27, %v170_v28  ;;  %v735_v27 = vrot.slane %v69_v22, %v6418_v2  ;;  %v759_v28 = vrot.slane %v80_v23, %v6418_v2 }
 0x13f   :  { %v6072_v32 = vpack.c.bf16 %v176_v30, %v175_v29  ;;  %v755_v30 = vrot.slane %v78_v25, %v6418_v2 }
 0x141   :  { %6074 = vmatprep.subr.msk.bf16.mxu0 %vm6348_vm1, %v6072_v32  ;;  %6164 = vmatprep.subr.msk.bf16.mxu1 %vm6348_vm1, %v6072_v32 }
 0x142   :  { %6077 = vmatpush3.bf16.xpose.msk.msra.mxu0 %vm6348_vm1, %v6072_v32  ;;  %6165 = vmatpush3.bf16.xpose.msk.msra.mxu1 %vm6348_vm1, %v6072_v32 }
 0x143   :  { %5774 = vmatprep.subr.mxu1 %v6282_v49  ;;  %5809 = vmatprep.subr.mxu0 %v6282_v49 }
 0x149   :  { %5757 = vmatmul.mubr.msk.f32.vlgmr.msra.gmra.mrb[0].mxu0 %vm138_vm0, %v107_v33  ;;  %5772 = vmatmul.mubr.msk.f32.vlgmr.msra.gmra.mrb[0].mxu1 %vm138_vm0, %v117_v47 }
 0x14a   :  { %5759 = vmatprep.mubr.msk.f32.mxu0 %vm138_vm0, %v108_v34  ;;  %5776 = vmatprep.mubr.msk.f32.mxu1 %vm6283_vm2, %v6282_v49  ;;  %v77_v34 = vcombine.high %v55_v3, %v55_v3 }
 0x14d   :  { %5760 = vmatmul.mubr.msk.f32.gmra.mrb[2].mxu0 %vm138_vm0, %v109_v35 }
 0x14e   :  { %5762 = vmatprep.mubr.msk.f32.mxu0 %vm138_vm0, %v110_v36 }
 0x151   :  { %5763 = vmatmul.mubr.msk.f32.gmra.mrb[4].mxu0 %vm138_vm0, %v111_v37 }
 0x152   :  { %5765 = vmatprep.mubr.msk.f32.mxu0 %vm138_vm0, %v112_v38 }
 0x155   :  { %5766 = vmatmul.mubr.msk.f32.gmra.mrb[6].mxu0 %vm138_vm0, %v113_v39 }
 0x156   :  { %5768 = vmatprep.mubr.msk.f32.mxu0 %vm138_vm0, %v114_v51 }
 0x159   :  { %5769 = vmatmul.mubr.msk.f32.gmra.mrb[8].mxu0 %vm138_vm0, %v115_v52 }
 0x15a   :  { %5811 = vmatprep.mubr.msk.f32.mxu0 %vm6283_vm2, %v6282_v49 }
 0x21c   :  { %v5758_v40 = vpop.f32.mrb[0].mxu0  ;;  %v6471_v54 = vpop.f32.mrb[0].mxu1 }
 0x21d   :  { %v285_v41 = vpop.f32.mrb[1].mxu0  ;;  %v6473_v55 = vpop.f32.mrb[1].mxu1 }
 0x21e   :  { %344 = vxpose.xlu1.b32.start.end [1/1] (short) (narrow) %v285_v41, 16 }
 0x220   :  { %v5761_v42 = vpop.f32.mrb[2].mxu0 }
 0x221   :  { %v295_v43 = vpop.f32.mrb[3].mxu0 }
 0x224   :  { %v5764_v44 = vpop.f32.mrb[4].mxu0 }
 0x225   :  { %v305_v45 = vpop.f32.mrb[5].mxu0 }
 0x226   :  { %472 = vxpose.xlu0.b32.start.end [1/1] (short) (narrow) %v305_v45, 16 }
 0x228   :  { %v5767_v48 = vpop.f32.mrb[6].mxu0 }
 0x229   :  { %v315_v50 = vpop.f32.mrb[7].mxu0 }
 0x22a   :  { %536 = vxpose.xlu1.b32.start.end [1/1] (short) (narrow) %v315_v50, 16 }
 0x22b   :  { %504 = vxpose.xlu0.b32.start.end [1/1] (short) (narrow) %v5764_v44, 16  ;;  %v79_v44 = vcombine.high %v69_v22, %v69_v22 }
 0x22c   :  { %v5770_v56 = vpop.f32.mrb[8].mxu0 }
 0x22d   :  { %v325_v57 = vpop.f32.mrb[9].mxu0 }
 0x22f   :  { %568 = vxpose.xlu1.b32.start.end [1/1] (short) (narrow) %v5767_v48, 16  ;;  %v743_v48 = vrot.slane %v79_v44, %v6418_v2 }
 0x230   :  { %376 = vxpose.xlu0.b32.start.end [1/1] (short) (narrow) %v5758_v40, 16  ;;  %v739_v40 = vrot.slane %v77_v34, %v6418_v2 }
 0x235   :  { %408 = vxpose.xlu0.b32.start.end [1/1] (short) (narrow) %v295_v43, 16 }
 0x23a   :  { %440 = vxpose.xlu0.b32.start.end [1/1] (short) (narrow) %v5761_v42, 16 }
 0x29e   :  { %v360_v4 = vpop.trf.xlu1 }
 0x29f   :  { %v788_v12 = vadd.f32 %v731_v7, %v360_v4 }
 0x2a2   :  { %v361_v9 = vpop.trf.xlu1 }
 0x2a3   :  { %v789_v18 = vadd.f32 %v731_v7, %v361_v9 }
 0x2a6   :  { %v488_v8 = vpop.trf.xlu0 }
 0x2a7   :  { %v796_v10 = vadd.f32 %v747_v5, %v488_v8 }
 0x2a9   :  { %5775 = vmatpush3.xpose.msk.msra.mxu1 %vm812_vm3, %v796_v10 }
 0x2aa   :  { %v489_v13 = vpop.trf.xlu0  ;;  %5779 = vmatprep.subr.mxu1 %v6282_v49  ;;  %v552_v14 = vpop.trf.xlu1 }
 0x2ab   :  { %v797_v15 = vadd.f32 %v747_v5, %v489_v13  ;;  %v800_v37 = vadd.f32 %v755_v30, %v552_v14 }
 0x2ac   :  { %5777 = vmatmul.mubr.msk.f32.vlgmr.msra.gmra.mrb[2].mxu1 %vm812_vm3, %v788_v12 }
 0x2ad   :  { %5780 = vmatpush3.xpose.msk.msra.mxu1 %vm812_vm3, %v797_v15  ;;  %5781 = vmatprep.mubr.msk.f32.mxu1 %vm6283_vm2, %v6282_v49 }
 0x2ae   :  { %v520_v19 = vpop.trf.xlu0  ;;  %5784 = vmatprep.subr.mxu1 %v6282_v49  ;;  %v553_v20 = vpop.trf.xlu1 }
 0x2af   :  { %v798_v21 = vadd.f32 %v751_v16, %v520_v19  ;;  %v801_v41 = vadd.f32 %v755_v30, %v553_v20 }
 0x2b0   :  { %5782 = vmatmul.mubr.msk.f32.vlgmr.msra.gmra.mrb[4].mxu1 %vm812_vm3, %v789_v18 }
 0x2b1   :  { %5785 = vmatpush3.xpose.msk.msra.mxu1 %vm812_vm3, %v798_v21  ;;  %5786 = vmatprep.mubr.msk.f32.mxu1 %vm6283_vm2, %v6282_v49 }
 0x2b2   :  { %v521_v24 = vpop.trf.xlu0  ;;  %5789 = vmatprep.subr.mxu1 %v6282_v49  ;;  %v584_v26 = vpop.trf.xlu1 }
 0x2b3   :  { %v799_v36 = vadd.f32 %v751_v16, %v521_v24  ;;  %v802_v45 = vadd.f32 %v759_v28, %v584_v26 }
 0x2b6   :  { %v392_v29 = vpop.trf.xlu0  ;;  %v585_v32 = vpop.trf.xlu1 }
 0x2b7   :  { %v790_v33 = vadd.f32 %v735_v27, %v392_v29  ;;  %v803_v35 = vadd.f32 %v759_v28, %v585_v32 }
 0x2b9   :  { %5787 = vmatmul.mubr.msk.f32.vlgmr.msra.gmra.mrb[6].mxu1 %vm812_vm3, %v790_v33  ;;  %5810 = vmatpush3.xpose.msk.msra.mxu0 %vm812_vm3, %v803_v35 }
 0x2ba   :  { %5790 = vmatpush3.xpose.msk.msra.mxu1 %vm812_vm3, %v799_v36  ;;  %v393_v38 = vpop.trf.xlu0  ;;  %5791 = vmatprep.mubr.msk.f32.mxu1 %vm6283_vm2, %v6282_v49 }
 0x2bb   :  { %v791_v39 = vadd.f32 %v735_v27, %v393_v38  ;;  %5794 = vmatprep.subr.mxu1 %v6282_v49  ;;  %5819 = vmatprep.subr.mxu0 %v6282_v49 }
 0x2bd   :  { %5792 = vmatmul.mubr.msk.f32.vlgmr.msra.gmra.mrb[8].mxu1 %vm812_vm3, %v791_v39 }
 0x2be   :  { %5795 = vmatpush3.xpose.msk.msra.mxu1 %vm812_vm3, %v800_v37  ;;  %v424_v42 = vpop.trf.xlu0  ;;  %5796 = vmatprep.mubr.msk.f32.mxu1 %vm6283_vm2, %v6282_v49 }
 0x2bf   :  { %v792_v43 = vadd.f32 %v739_v40, %v424_v42  ;;  %5799 = vmatprep.subr.mxu1 %v6282_v49 }
 0x2c1   :  { %5797 = vmatmul.mubr.msk.f32.vlgmr.msra.gmra.mrb[10].mxu1 %vm812_vm3, %v792_v43 }
 0x2c2   :  { %5800 = vmatpush3.xpose.msk.msra.mxu1 %vm812_vm3, %v801_v41  ;;  %v425_v46 = vpop.trf.xlu0  ;;  %5801 = vmatprep.mubr.msk.f32.mxu1 %vm6283_vm2, %v6282_v49 }
 0x2c3   :  { %v793_v47 = vadd.f32 %v739_v40, %v425_v46  ;;  %5804 = vmatprep.subr.mxu1 %v6282_v49 }
 0x2c5   :  { %5802 = vmatmul.mubr.msk.f32.vlgmr.msra.gmra.mrb[12].mxu1 %vm812_vm3, %v793_v47 }
 0x2c6   :  { %5805 = vmatpush3.xpose.msk.msra.mxu1 %vm812_vm3, %v802_v45  ;;  %v456_v50 = vpop.trf.xlu0  ;;  %5806 = vmatprep.mubr.msk.f32.mxu1 %vm6283_vm2, %v6282_v49 }
 0x2c7   :  { %v794_v51 = vadd.f32 %v743_v48, %v456_v50  ;;  %5814 = vmatprep.subr.mxu1 %v6282_v49 }
 0x2c9   :  { %5807 = vmatmul.mubr.msk.f32.vlgmr.msra.gmra.mrb[14].mxu1 %vm812_vm3, %v794_v51 }
 0x2ca   :  { %v457_v52 = vpop.trf.xlu0  ;;  %5816 = vmatprep.mubr.msk.f32.mxu1 %vm6283_vm2, %v6282_v49 }
 0x2cb   :  { %v795_v53 = vadd.f32 %v743_v48, %v457_v52 }
 0x2cd   :  { %5812 = vmatmul.mubr.msk.f32.vlgmr.msra.gmra.mrb[10].mxu0 %vm812_vm3, %v795_v53 }
 0x2ce   :  { %5821 = vmatprep.mubr.msk.f32.mxu0 %vm6283_vm2, %v6282_v49 }
 0x37f   :  { %v885_v58 = vpop.f32.mrb[2].mxu1 }
 0x380   :  { %v1421_v59 = vsel %vm812_vm3, %v885_v58, -inf  ;;  %v5778_v61 = vpop.f32.mrb[3].mxu1 }
 0x381   :  { %1422 = vmax.xlane.f32.xlu1 %v1421_v59 }
 0x383   :  { %v961_v62 = vpop.f32.mrb[4].mxu1 }
 0x384   :  { %v1424_v63 = vsel %vm812_vm3, %v961_v62, -inf  ;;  %v5783_v3 = vpop.f32.mrb[5].mxu1 }
 0x385   :  { %1425 = vmax.xlane.f32.xlu0 %v1424_v63 }
 0x38c   :  { %v1037_v4 = vpop.f32.mrb[6].mxu1 }
 0x38d   :  { %v5788_v5 = vpop.f32.mrb[7].mxu1  ;;  %v1427_v6 = vsel %vm812_vm3, %v1037_v4, -inf }
 0x38e   :  { %1428 = vmax.xlane.f32.xlu1 %v1427_v6  ;;  %v5419_v6 = vld.sshfl [vmem:[%s7084_s2 + $0x10] sm:$0x33 pattern:$0x75316420] }
 0x390   :  { %v1113_v7 = vpop.f32.mrb[8].mxu1 }
 0x391   :  { %v5793_v8 = vpop.f32.mrb[9].mxu1  ;;  %v1430_v9 = vsel %vm812_vm3, %v1113_v7, -inf }
 0x392   :  { %1431 = vmax.xlane.f32.xlu1 %v1430_v9 }
 0x394   :  { %v1189_v10 = vpop.f32.mrb[10].mxu1 }
 0x395   :  { %v5798_v11 = vpop.f32.mrb[11].mxu1  ;;  %v1433_v12 = vsel %vm812_vm3, %v1189_v10, -inf }
 0x396   :  { %1434 = vmax.xlane.f32.xlu1 %v1433_v12 }
 0x398   :  { %v1265_v13 = vpop.f32.mrb[12].mxu1 }
 0x399   :  { %v5803_v14 = vpop.f32.mrb[13].mxu1  ;;  %v1436_v21 = vsel %vm812_vm3, %v1265_v13, -inf }
 0x39c   :  { %v1341_v15 = vpop.f32.mrb[14].mxu1 }
 0x39d   :  { %v5808_v16 = vpop.f32.mrb[15].mxu1  ;;  %v1439_v17 = vsel %vm812_vm3, %v1341_v15, -inf }
 0x39e   :  { %1440 = vmax.xlane.f32.xlu1 %v1439_v17 }
 0x3a0   :  { %v1417_v18 = vpop.f32.mrb[10].mxu0 }
 0x3a1   :  { %v5813_v19 = vpop.f32.mrb[11].mxu0  ;;  %v1442_v20 = vsel %vm812_vm3, %v1417_v18, -inf }
 0x3a2   :  { %1443 = vmax.xlane.f32.xlu0 %v1442_v20 }
 0x3a6   :  { %1437 = vmax.xlane.f32.xlu0 %v1436_v21 }
 0x3d1   :  { %600 = vxpose.xlu1.b32.start.end [1/1] (short) (narrow) %v325_v57, 16 }
 0x3d3   :  { %632 = vxpose.xlu0.b32.start.end [1/1] (short) (narrow) %v5770_v56, 16 }
 0x40e   :  { %v1423_v22 = vpop.xlane.xlu1 %1422 }
 0x40f   :  { %v1445_v23 = vsub.f32 %v885_v58, %v1423_v22 }
 0x411   :  { %v1453_v24 = vmul.f32 1.442695, %v1445_v23 }
 0x412   :  { %v1426_v25 = vpop.xlane.xlu0 %1425 }
 0x413   :  { %6178 = vpow2.f32 %v1453_v24  ;;  %v1446_v26 = vsub.f32 %v961_v62, %v1426_v25 }
 0x415   :  { %v1455_v27 = vmul.f32 1.442695, %v1446_v26 }
 0x417   :  { %6180 = vpow2.f32 %v1455_v27 }
 0x41b   :  { %v1429_v28 = vpop.xlane.xlu1 %1428 }
 0x41c   :  { %v1447_v29 = vsub.f32 %v1037_v4, %v1429_v28 }
 0x41d   :  { %v6483_v30 = vpop.eup %6178 }
 0x41e   :  { %v1457_v32 = vmul.f32 1.442695, %v1447_v29  ;;  %v1469_v33 = vsel %vm812_vm3, %v6483_v30, 0.0 }
 0x41f   :  { %v1432_v34 = vpop.xlane.xlu1 %1431  ;;  %1470 = vadd.xlane.f32.xlu1 %v1469_v33 }
 0x420   :  { %6182 = vpow2.f32 %v1457_v32  ;;  %v1448_v44 = vsub.f32 %v1113_v7, %v1432_v34  ;;  %v95_v7 = vrot.slane %v5419_v6, %v6413_v60 }
 0x421   :  { %v6487_v35 = vpop.eup %6180 }
 0x422   :  { %v1472_v36 = vsel %vm812_vm3, %v6487_v35, 0.0  ;;  %v1459_v50 = vmul.f32 1.442695, %v1448_v44  ;;  %v763_v8 = vrot.slane %v95_v7, %v6418_v2 }
 0x423   :  { %v1435_v37 = vpop.xlane.xlu1 %1434  ;;  %1473 = vadd.xlane.f32.xlu0 %v1472_v36 }
 0x424   :  { %v1449_v38 = vsub.f32 %v1189_v10, %v1435_v37 }
 0x426   :  { %v1461_v39 = vmul.f32 1.442695, %v1449_v38 }
 0x428   :  { %6184 = vpow2.f32 %v1461_v39 }
 0x42a   :  { %v6491_v40 = vpop.eup %6182 }
 0x42b   :  { %v1441_v41 = vpop.xlane.xlu1 %1440  ;;  %v1475_v42 = vsel %vm812_vm3, %v6491_v40, 0.0 }
 0x42c   :  { %v1451_v43 = vsub.f32 %v1341_v15, %v1441_v41  ;;  %1476 = vadd.xlane.f32.xlu1 %v1475_v42  ;;  %v88_v15 = vcombine.high %v5419_v6, %v5419_v6 }
 0x42e   :  { %v1465_v45 = vmul.f32 1.442695, %v1451_v43  ;;  %v102_v17 = vrot.slane %v88_v15, %v6413_v60 }
 0x42f   :  { %v1444_v46 = vpop.xlane.xlu0 %1443 }
 0x430   :  { %6186 = vpow2.f32 %v1465_v45  ;;  %v1452_v47 = vsub.f32 %v1417_v18, %v1444_v46  ;;  %v767_v19 = vrot.slane %v102_v17, %v6418_v2  ;;  %v104_v36 = vcombine.high %v102_v17, %v102_v17 }
 0x432   :  { %v6495_v48 = vpop.eup %6184  ;;  %v1467_v51 = vmul.f32 1.442695, %v1452_v47  ;;  %v775_v38 = vrot.slane %v104_v36, %v6418_v2 }
 0x433   :  { %v1438_v52 = vpop.xlane.xlu0 %1437  ;;  %v1481_v53 = vsel %vm812_vm3, %v6495_v48, 0.0 }
 0x434   :  { %6188 = vpow2.f32 %v1467_v51  ;;  %v1450_v56 = vsub.f32 %v1265_v13, %v1438_v52  ;;  %1482 = vadd.xlane.f32.xlu1 %v1481_v53 }
 0x435   :  { %6190 = vpow2.f32 %v1459_v50 }
 0x436   :  { %v1463_v57 = vmul.f32 1.442695, %v1450_v56 }
 0x438   :  { %6192 = vpow2.f32 %v1463_v57 }
 0x43a   :  { %v6499_v58 = vpop.eup %6186 }
 0x43b   :  { %v1487_v59 = vsel %vm812_vm3, %v6499_v58, 0.0 }
 0x43c   :  { %1488 = vadd.xlane.f32.xlu1 %v1487_v59  ;;  %v119_v59 = vld [vmem:[%s7083_s1 + $0x68] sm:$0xff] }
 0x43e   :  { %v6503_v61 = vpop.eup %6188 }
 0x43f   :  { %v1490_v62 = vsel %vm812_vm3, %v6503_v61, 0.0  ;;  %v6191_v63 = vpop.eup %6190 }
 0x440   :  { %1491 = vadd.xlane.f32.xlu0 %v1490_v62  ;;  %v1478_v3 = vsel %vm812_vm3, %v6191_v63, 0.0  ;;  %v120_v62 = vld [vmem:[%s7083_s1 + $0x70] sm:$0xff] }
 0x442   :  { %v6508_v4 = vpop.eup %6192 }
 0x443   :  { %v1484_v5 = vsel %vm812_vm3, %v6508_v4, 0.0 }
 0x444   :  { %1479 = vadd.xlane.f32.xlu0 %v1478_v3 }
 0x448   :  { %1485 = vadd.xlane.f32.xlu0 %v1484_v5 }
 0x451   :  { %v616_v9 = vpop.trf.xlu1 }
 0x452   :  { %v804_v10 = vadd.f32 %v763_v8, %v616_v9 }
 0x453   :  { %v648_v13 = vpop.trf.xlu0 }
 0x454   :  { %5815 = vmatpush3.msra.mxu1 %v804_v10  ;;  %v806_v21 = vadd.f32 %v767_v19, %v648_v13 }
 0x455   :  { %v617_v11 = vpop.trf.xlu1  ;;  %5824 = vmatprep.subr.mxu1 %v6282_v49 }
 0x456   :  { %v805_v12 = vadd.f32 %v763_v8, %v617_v11 }
 0x457   :  { %v649_v14 = vpop.trf.xlu0 }
 0x458   :  { %5820 = vmatpush3.msra.mxu0 %v805_v12 }
 0x459   :  { %5829 = vmatprep.subr.mxu0 %v6282_v49 }
 0x46f   :  { %696 = vxpose.xlu1.b32.start.end [1/1] (short) (narrow) %v6471_v54, 16 }
 0x475   :  { %664 = vxpose.xlu0.b32.start.end [1/1] (short) (narrow) %v6473_v55, 16  ;;  %v807_v55 = vadd.f32 %v767_v19, %v649_v14 }
 0x4ac   :  { %v1471_v16 = vpop.xlane.xlu1 %1470 }
 0x4ad   :  { %6194 = vrcp.f32 %v1471_v16 }
 0x4b0   :  { %v1474_v18 = vpop.xlane.xlu0 %1473 }
 0x4b1   :  { %6196 = vrcp.f32 %v1474_v18 }
 0x4b7   :  { %v6195_v20 = vpop.eup %6194 }
 0x4b8   :  { %v1494_v22 = vmul.f32 %v6195_v20, %v6483_v30 }
 0x4b9   :  { %v1477_v23 = vpop.xlane.xlu1 %1476 }
 0x4ba   :  { %6198 = vrcp.f32 %v1477_v23  ;;  %5817 = vmatmul.mubr.msk.f32.vlgmr.msra.gmra.mrb[16].mxu1 %vm812_vm3, %v1494_v22 }
 0x4bb   :  { %v6197_v54 = vpop.eup %6196  ;;  %5825 = vmatpush3.msra.mxu1 %v806_v21  ;;  %5826 = vmatprep.mubr.msk.f32.mxu1 %vm6283_vm2, %v6282_v49 }
 0x4bc   :  { %v1496_v24 = vmul.f32 %v6197_v54, %v6487_v35  ;;  %5834 = vmatprep.subr.mxu1 %v6282_v49  ;;  %v103_v35 = vcombine.high %v95_v7, %v95_v7 }
 0x4be   :  { %5822 = vmatmul.mubr.msk.f32.vlgmr.msra.gmra.mrb[12].mxu0 %vm812_vm3, %v1496_v24  ;;  %v771_v37 = vrot.slane %v103_v35, %v6418_v2 }
 0x4bf   :  { %5830 = vmatpush3.msra.mxu0 %v807_v55  ;;  %5831 = vmatprep.mubr.msk.f32.mxu0 %vm6283_vm2, %v6282_v49 }
 0x4c0   :  { %5839 = vmatprep.subr.mxu0 %v6282_v49 }
 0x4c1   :  { %v1483_v32 = vpop.xlane.xlu1 %1482 }
 0x4c4   :  { %v6199_v25 = vpop.eup %6198 }
 0x4c5   :  { %v1498_v26 = vmul.f32 %v6199_v25, %v6491_v40 }
 0x4c7   :  { %5827 = vmatmul.mubr.msk.f32.vlgmr.msra.gmra.mrb[18].mxu1 %vm812_vm3, %v1498_v26 }
 0x4c8   :  { %5836 = vmatprep.mubr.msk.f32.mxu1 %vm6283_vm2, %v6282_v49 }
 0x4c9   :  { %v1489_v33 = vpop.xlane.xlu1 %1488 }
 0x4cd   :  { %v1492_v27 = vpop.xlane.xlu0 %1491 }
 0x4d1   :  { %v1480_v28 = vpop.xlane.xlu0 %1479 }
 0x4d2   :  { %6200 = vrcp.f32 %v1480_v28 }
 0x4d3   :  { %6202 = vrcp.f32 %v1483_v32 }
 0x4d4   :  { %6204 = vrcp.f32 %v1489_v33 }
 0x4d5   :  { %v1486_v34 = vpop.xlane.xlu0 %1485 }
 0x4d6   :  { %6206 = vrcp.f32 %v1486_v34 }
 0x4d7   :  { %6208 = vrcp.f32 %v1492_v27 }
 0x4dc   :  { %v6201_v29 = vpop.eup %6200 }
 0x4dd   :  { %v1500_v30 = vmul.f32 %v6201_v29, %v6191_v63  ;;  %v6203_v40 = vpop.eup %6202 }
 0x4de   :  { %v6205_v44 = vpop.eup %6204  ;;  %v1502_v45 = vmul.f32 %v6203_v40, %v6495_v48 }
 0x4df   :  { %5832 = vmatmul.mubr.msk.f32.vlgmr.msra.gmra.mrb[14].mxu0 %vm812_vm3, %v1500_v30  ;;  %v1506_v52 = vmul.f32 %v6205_v44, %v6499_v58  ;;  %v118_v58 = vld [vmem:[%s7083_s1 + $0x60] sm:$0xff] }
 0x4e0   :  { %5841 = vmatprep.mubr.msk.f32.mxu0 %vm6283_vm2, %v6282_v49  ;;  %v6207_v46 = vpop.eup %6206 }
 0x4e1   :  { %v1504_v53 = vmul.f32 %v6207_v46, %v6508_v4  ;;  %v6209_v57 = vpop.eup %6208  ;;  %v122_v46 = vld [vmem:[%s7083_s1 + $0x80] sm:$0xff] }
 0x4e2   :  { %v1508_v48 = vmul.f32 %v6209_v57, %v6503_v61  ;;  %v121_v61 = vld [vmem:[%s7083_s1 + $0x78] sm:$0xff] }
 0x4ef   :  { %v712_v39 = vpop.trf.xlu1 }
 0x4f0   :  { %v810_v43 = vadd.f32 %v775_v38, %v712_v39  ;;  %v5468_v39 = vld [vmem:[%s7084_s2 + $0x4] ss:$0 sm:$0xff] }
 0x4f3   :  { %v713_v47 = vpop.trf.xlu1 }
 0x4f4   :  { %v811_v56 = vadd.f32 %v775_v38, %v713_v47 }
 0x4f5   :  { %v680_v41 = vpop.trf.xlu0 }
 0x4f6   :  { %v808_v42 = vadd.f32 %v771_v37, %v680_v41 }
 0x4f8   :  { %5835 = vmatpush3.msra.mxu1 %v808_v42 }
 0x4f9   :  { %5837 = vmatmul.mubr.msk.f32.vlgmr.msra.gmra.mrb[20].mxu1 %vm812_vm3, %v1502_v45  ;;  %v681_v50 = vpop.trf.xlu0  ;;  %5844 = vmatprep.subr.mxu1 %v6282_v49 }
 0x4fa   :  { %v809_v51 = vadd.f32 %v771_v37, %v681_v50  ;;  %5845 = vmatpush3.msra.mxu1 %v810_v43  ;;  %5846 = vmatprep.mubr.msk.f32.mxu1 %vm6283_vm2, %v6282_v49  ;;  %v125_v50 = vld [vmem:[%s7083_s1 + $0x98] sm:$0xff] }
 0x4fb   :  { %5854 = vmatprep.subr.mxu1 %v118_v58 }
 0x4fc   :  { %5840 = vmatpush3.msra.mxu0 %v809_v51 }
 0x4fd   :  { %5842 = vmatmul.mubr.msk.f32.vlgmr.msra.gmra.mrb[16].mxu0 %vm812_vm3, %v1504_v53  ;;  %5847 = vmatmul.mubr.msk.f32.vlgmr.msra.gmra.mrb[22].mxu1 %vm812_vm3, %v1506_v52 }
 0x4fe   :  { %5849 = vmatprep.subr.mxu0 %v6282_v49  ;;  %5851 = vmatprep.mubr.msk.f32.mxu0 %vm6283_vm2, %v6282_v49 }
 0x4ff   :  { %5850 = vmatpush3.msra.mxu0 %v811_v56  ;;  %5855 = vmatpush3.msra.mxu1 %v118_v58 }
 0x500   :  { %5859 = vmatprep.subr.mxu0 %v119_v59  ;;  %5864 = vmatprep.subr.mxu1 %v120_v62 }
 0x501   :  { %5852 = vmatmul.mubr.msk.f32.vlgmr.msra.gmra.mrb[18].mxu0 %vm812_vm3, %v1508_v48 }
 0x502   :  { %5860 = vmatpush3.msra.mxu0 %v119_v59 }
 0x503   :  { %5869 = vmatprep.subr.mxu0 %v121_v61 }
 0x58d   :  { %v1578_v63 = vpop.f32.mrb[16].mxu1 }
 0x58e   :  { %v5818_v3 = vpop.f32.mrb[17].mxu1  ;;  %5856 = vmatprep.mubr.msk.f32.mxu1 %vm812_vm3, %v1578_v63 }
 0x58f   :  { %v126_v3 = vld [vmem:[%s7083_s1 + $0xa0] sm:$0xff] }
 0x591   :  { %v1651_v4 = vpop.f32.mrb[12].mxu0 }
 0x592   :  { %v5823_v5 = vpop.f32.mrb[13].mxu0  ;;  %5857 = vmatmul.mubr.msk.f32.vlgmr.msra.gmra.mrb[24].mxu1 %vm812_vm3, %v1651_v4  ;;  %v127_v4 = vld [vmem:[%s7083_s1 + $0xa8] sm:$0xff] }
 0x593   :  { %5865 = vmatpush3.msra.mxu1 %v120_v62  ;;  %v6090_v5 = vpack.c.bf16 %v127_v4, %v126_v3  ;;  %v5495_v3 = vld [vmem:[%s7083_s1 + $0x100] sm:$0xff] }
 0x59a   :  { %v1724_v6 = vpop.f32.mrb[18].mxu1 }
 0x59b   :  { %v5828_v7 = vpop.f32.mrb[19].mxu1  ;;  %5861 = vmatprep.mubr.msk.f32.mxu0 %vm812_vm3, %v1724_v6  ;;  %v128_v6 = vld [vmem:[%s7083_s1 + $0xb0] sm:$0xff] }
 0x59c   :  { %v129_v7 = vld [vmem:[%s7083_s1 + $0xb8] sm:$0xff] }
 0x5b2   :  { %v1797_v8 = vpop.f32.mrb[14].mxu0 }
 0x5b3   :  { %v5833_v9 = vpop.f32.mrb[15].mxu0  ;;  %5862 = vmatmul.mubr.msk.f32.vlgmr.msra.gmra.mrb[20].mxu0 %vm812_vm3, %v1797_v8  ;;  %v6096_v8 = vpack.c.bf16 %v129_v7, %v128_v6 }
 0x5b4   :  { %5870 = vmatpush3.msra.mxu0 %v121_v61  ;;  %v130_v9 = vld [vmem:[%s7083_s1 + $0xc0] sm:$0xff] }
 0x5cc   :  { %v1870_v10 = vpop.f32.mrb[20].mxu1 }
 0x5cd   :  { %v5838_v11 = vpop.f32.mrb[21].mxu1  ;;  %5866 = vmatprep.mubr.msk.f32.mxu1 %vm812_vm3, %v1870_v10  ;;  %v131_v10 = vld [vmem:[%s7083_s1 + $0xc8] sm:$0xff] }
 0x5ce   :  { %v132_v11 = vld [vmem:[%s7083_s1 + $0xd0] sm:$0xff] }
 0x5d0   :  { %v1943_v12 = vpop.f32.mrb[16].mxu0  ;;  %v2016_v13 = vpop.f32.mrb[22].mxu1 }
 0x5d1   :  { %v5843_v14 = vpop.f32.mrb[17].mxu0  ;;  %v5848_v15 = vpop.f32.mrb[23].mxu1  ;;  %5867 = vmatmul.mubr.msk.f32.vlgmr.msra.gmra.mrb[26].mxu1 %vm812_vm3, %v1943_v12  ;;  %5871 = vmatprep.mubr.msk.f32.mxu0 %vm812_vm3, %v2016_v13  ;;  %v6102_v12 = vpack.c.bf16 %v131_v10, %v130_v9  ;;  %v133_v13 = vld [vmem:[%s7083_s1 + $0xd8] sm:$0xff] }
 0x5d2   :  { %v6106_v14 = vpack.c.bf16 %v133_v13, %v132_v11  ;;  %v134_v15 = vld [vmem:[%s7083_s1 + $0xe0] sm:$0xff]  ;;  %v5527_v11 = vld [vmem:[%s7084_s2 + $0x18] ss:$0 sm:$0xff] }
 0x5d3   :  { %6103 = vmatprep.subr.bf16.mxu0 %v6102_v12 }
 0x5d4   :  { %v2089_v16 = vpop.f32.mrb[18].mxu0 }
 0x5d5   :  { %v5853_v17 = vpop.f32.mrb[19].mxu0  ;;  %5872 = vmatmul.mubr.msk.f32.vlgmr.msra.gmra.mrb[22].mxu0 %vm812_vm3, %v2089_v16  ;;  %v135_v16 = vld [vmem:[%s7083_s1 + $0xe8] sm:$0xff] }
 0x5d6   :  { %6105 = vmatpush3.bf16.msra.mxu0 %v6102_v12  ;;  %v6110_v17 = vpack.c.bf16 %v135_v16, %v134_v15  ;;  %v5528_v15 = vld [vmem:[%s7084_s2 + $0x19] ss:$0 sm:$0xff] }
 0x5d7   :  { %6107 = vmatprep.subr.bf16.mxu0 %v6106_v14 }
 0x5da   :  { %6109 = vmatpush3.bf16.msra.mxu0 %v6106_v14 }
 0x5db   :  { %6111 = vmatprep.subr.bf16.mxu0 %v6110_v17 }
 0x5de   :  { %6113 = vmatpush3.bf16.msra.mxu0 %v6110_v17 }
 0x665   :  { %v5858_v18 = vpop.f32.mrb[24].mxu1 }
 0x666   :  { %v2165_v19 = vpop.f32.mrb[25].mxu1  ;;  %v2424_v21 = vsel %vm138_vm0, %v5858_v18, 0.0 }
 0x667   :  { %v2417_v54 = vsel %vm138_vm0, %v2165_v19, 0.0 }
 0x686   :  { %v5863_v20 = vpop.f32.mrb[20].mxu0 }
 0x687   :  { %v2425_v22 = vsel %vm138_vm0, %v5863_v20, 0.0  ;;  %v2246_v23 = vpop.f32.mrb[21].mxu0 }
 0x688   :  { %v2426_v55 = vadd.f32 %v2425_v22, %v2424_v21  ;;  %v2418_v24 = vsel %vm138_vm0, %v2246_v23, 0.0 }
 0x689   :  { %v2419_v25 = vadd.f32 %v2418_v24, %v2417_v54 }
 0x6a4   :  { %v5868_v26 = vpop.f32.mrb[26].mxu1 }
 0x6a5   :  { %v2427_v27 = vsel %vm138_vm0, %v5868_v26, 0.0  ;;  %v2327_v28 = vpop.f32.mrb[27].mxu1 }
 0x6a6   :  { %v2428_v29 = vadd.f32 %v2427_v27, %v2426_v55  ;;  %v2420_v30 = vsel %vm138_vm0, %v2327_v28, 0.0  ;;  %v5469_v55 = vld [vmem:[%s7084_s2 + $0x2] ss:$0 sm:$0xff]  ;;  %v5470_v27 = vld [vmem:[%s7084_s2 + $0x3] ss:$0 sm:$0xff] }
 0x6a7   :  { %v2421_v32 = vadd.f32 %v2420_v30, %v2419_v25 }
 0x6a8   :  { %v5873_v33 = vpop.f32.mrb[22].mxu0 }
 0x6a9   :  { %v2429_v34 = vsel %vm138_vm0, %v5873_v33, 0.0  ;;  %v2408_v35 = vpop.f32.mrb[23].mxu0  ;;  %v136_v33 = vld [vmem:[%s7083_s1 + $0xf0] sm:$0xff] }
 0x6aa   :  { %v2430_v36 = vadd.f32 %v2429_v34, %v2428_v29  ;;  %v2422_v37 = vsel %vm138_vm0, %v2408_v35, 0.0  ;;  %v137_v34 = vld [vmem:[%s7083_s1 + $0xf8] sm:$0xff] }
 0x6ab   :  { %v2423_v38 = vadd.f32 %v2422_v37, %v2421_v32  ;;  %v6114_v35 = vpack.c.bf16 %v137_v34, %v136_v33 }
 0x6ac   :  { %v2432_v40 = vadd.f32 %v2430_v36, %v6326_v1  ;;  %v124_v1 = vld [vmem:[%s7083_s1 + $0x90] sm:$0xff]  ;;  %v5471_v36 = vld [vmem:[%s7085_s3] ss:$0 sm:$0xff] }
 0x6ad   :  { %v2431_v41 = vadd.f32 %v2423_v38, %v6321_v0  ;;  %v123_v0 = vld [vmem:[%s7083_s1 + $0x88] sm:$0xff]  ;;  %v6084_v51 = vpack.c.bf16 %v125_v50, %v124_v1  ;;  %6115 = vmatprep.subr.bf16.mxu0 %v6114_v35 }
 0x6ae   :  { %v6589_v42 = vadd.f32 %v5468_v39, %v2432_v40  ;;  %v6078_v47 = vpack.c.bf16 %v123_v0, %v122_v46  ;;  %6117 = vmatpush3.bf16.msra.mxu0 %v6114_v35  ;;  %v5503_v35 = vld [vmem:[%s7083_s1 + $0x140] sm:$0xff] }
 0x6af   :  { %v6591_v43 = vadd.f32 %v5468_v39, %v2431_v41 }
 0x6b0   :  { %v2442_v44 = vsel %vm138_vm0, %v6589_v42, 0.0  ;;  %6080 = vmatprep.subr.msk.bf16.mxu1 %vm6348_vm1, %v6078_v47 }
 0x6b1   :  { %2443 = vadd.xlane.f32.xlu1 %v2442_v44  ;;  %v2439_v45 = vsel %vm138_vm0, %v6591_v43, 0.0  ;;  %6083 = vmatpush3.bf16.xpose.msk.msra.mxu1 %vm6348_vm1, %v6078_v47 }
 0x6b2   :  { %2440 = vadd.xlane.f32.xlu0 %v2439_v45  ;;  %6086 = vmatprep.subr.msk.bf16.mxu1 %vm6348_vm1, %v6084_v51  ;;  %v5484_v45 = vld [vmem:[%s7084_s2 + $0x5] ss:$0 sm:$0xff] }
 0x6b9   :  { %6089 = vmatpush3.bf16.xpose.msk.msra.mxu1 %vm6348_vm1, %v6084_v51 }
 0x6ba   :  { %6092 = vmatprep.subr.msk.bf16.mxu1 %vm6348_vm1, %v6090_v5 }
 0x6c1   :  { %6095 = vmatpush3.bf16.xpose.msk.msra.mxu1 %vm6348_vm1, %v6090_v5 }
 0x6c2   :  { %6098 = vmatprep.subr.msk.bf16.mxu1 %vm6348_vm1, %v6096_v8 }
 0x6c9   :  { %6101 = vmatpush3.bf16.xpose.msk.msra.mxu1 %vm6348_vm1, %v6096_v8 }
 0x6ca   :  { %5934 = vmatprep.subr.mxu1 %v6282_v49 }
 0x73e   :  { %v2444_v52 = vpop.xlane.xlu1 %2443 }
 0x73f   :  { %v2446_v53 = vmul.f32 0.03125, %v2444_v52  ;;  %v2441_v56 = vpop.xlane.xlu0 %2440 }
 0x740   :  { %v2445_v57 = vmul.f32 0.03125, %v2441_v56 }
 0x741   :  { %v2448_v48 = vsub.f32 %v6589_v42, %v2446_v53 }
 0x742   :  { %v2447_v58 = vsub.f32 %v6591_v43, %v2445_v57 }
 0x743   :  { %v2450_v59 = vmul.f32 %v2448_v48, %v2448_v48 }
 0x744   :  { %v2449_v62 = vmul.f32 %v2447_v58, %v2447_v58 }
 0x745   :  { %v2454_v61 = vsel %vm138_vm0, %v2450_v59, 0.0 }
 0x746   :  { %2455 = vadd.xlane.f32.xlu0 %v2454_v61  ;;  %v2451_v63 = vsel %vm138_vm0, %v2449_v62, 0.0 }
 0x747   :  { %2452 = vadd.xlane.f32.xlu1 %v2451_v63 }
 0x7d3   :  { %v2456_v18 = vpop.xlane.xlu0 %2455 }
 0x7d4   :  { %v2458_v19 = vmul.f32 0.03125, %v2456_v18  ;;  %v2453_v20 = vpop.xlane.xlu1 %2452 }
 0x7d5   :  { %v2457_v21 = vmul.f32 0.03125, %v2453_v20 }
 0x7d6   :  { %v2460_v22 = vadd.f32 1e-05, %v2458_v19 }
 0x7d7   :  { %v2459_v23 = vadd.f32 1e-05, %v2457_v21  ;;  %v5496_v21 = vld [vmem:[%s7083_s1 + $0x108] sm:$0xff] }
 0x7d8   :  { %6210 = vrsqrt.f32 %v2460_v22  ;;  %v5497_v22 = vld [vmem:[%s7083_s1 + $0x110] sm:$0xff] }
 0x7d9   :  { %6212 = vrsqrt.f32 %v2459_v23  ;;  %v5498_v23 = vld [vmem:[%s7083_s1 + $0x118] sm:$0xff] }
 0x7e2   :  { %v6211_v54 = vpop.eup %6210 }
 0x7e3   :  { %v6213_v24 = vpop.eup %6212  ;;  %v2464_v25 = vmul.f32 %v6211_v54, %v2448_v48  ;;  %v5499_v54 = vld [vmem:[%s7083_s1 + $0x120] sm:$0xff] }
 0x7e4   :  { %v2463_v26 = vmul.f32 %v6213_v24, %v2447_v58  ;;  %v5501_v24 = vld [vmem:[%s7083_s1 + $0x130] sm:$0xff] }
 0x7e5   :  { %v2470_v28 = vmul.f32 %v5469_v55, %v2464_v25  ;;  %v5502_v25 = vld [vmem:[%s7083_s1 + $0x138] sm:$0xff] }
 0x7e6   :  { %v2469_v29 = vmul.f32 %v5469_v55, %v2463_v26  ;;  %v5500_v55 = vld [vmem:[%s7083_s1 + $0x128] sm:$0xff] }
 0x7e7   :  { %v2476_v32 = vadd.f32 %v5470_v27, %v2470_v28 }
 0x7e8   :  { %v2475_v30 = vadd.f32 %v5470_v27, %v2469_v29 }
 0x7ea   :  { %5890 = vmatprep.mubr.msk.f32.mxu1 %vm138_vm0, %v2475_v30 }
 0x7eb   :  { %5891 = vmatmul.mubr.msk.f32.vlgmr.msra.gmra.mrb[28].mxu1 %vm138_vm0, %v2476_v32 }
 0x7ec   :  { %5936 = vmatprep.mubr.msk.f32.mxu1 %vm6283_vm2, %v6282_v49 }
 0x8be   :  { %v5892_v37 = vpop.f32.mrb[28].mxu1 }
 0x8bf   :  { %v2585_v38 = vadd.f32 %v5892_v37, %v5471_v36  ;;  %v2579_v39 = vpop.f32.mrb[29].mxu1  ;;  %v5505_v37 = vld [vmem:[%s7083_s1 + $0x150] sm:$0xff] }
 0x8c0   :  { %v2580_v40 = vadd.f32 %v5471_v36, %v2579_v39  ;;  %v5504_v36 = vld [vmem:[%s7083_s1 + $0x148] sm:$0xff]  ;;  %v5491_v39 = vld [vmem:[%s7084_s2 + $0x20] sm:$0xff] }
 0x8c1   :  { %v2589_v44 = vmax.f32 %v2585_v38, 0.0  ;;  %v5506_v38 = vld [vmem:[%s7083_s1 + $0x158] sm:$0xff] }
 0x8c2   :  { %v2588_v41 = vmax.f32 %v2580_v40, 0.0  ;;  %v2691_v40 = vcombine.high %v5491_v39, %v5491_v39 }
 0x8c4   :  { %5909 = vmatprep.mubr.msk.f32.mxu0 %vm2590_vm4, %v2588_v41  ;;  %v2705_v41 = vrot.slane %v2691_v40, %v6413_v60 }
 0x8c5   :  { %5910 = vmatmul.mubr.msk.f32.vlgmr.msra.gmra.mrb[24].mxu0 %vm2590_vm4, %v2589_v44  ;;  %v2698_v44 = vrot.slane %v5491_v39, %v6413_v60 }
 0x8c6   :  { %5916 = vmatprep.mubr.msk.f32.mxu0 %vm138_vm0, %v5495_v3 }
 0x998   :  { %v5911_v46 = vpop.f32.mrb[24].mxu0 }
 0x999   :  { %v2673_v0 = vadd.f32 %v5911_v46, %v6589_v42  ;;  %v2663_v1 = vpop.f32.mrb[25].mxu0  ;;  %v2721_v46 = vrot.slane %v2705_v41, %v6413_v60 }
 0x99a   :  { %v2672_v47 = vadd.f32 %v2663_v1, %v6591_v43 }
 0x99b   :  { %v6686_v50 = vadd.f32 %v5484_v45, %v2673_v0  ;;  %v2714_v0 = vrot.slane %v2698_v44, %v6413_v60 }
 0x99c   :  { %v6688_v51 = vadd.f32 %v5484_v45, %v2672_v47  ;;  %v2707_v47 = vcombine.high %v2705_v41, %v2705_v41 }
 0x99d   :  { %v2802_v52 = vsel %vm138_vm0, %v6686_v50, 0.0 }
 0x99e   :  { %2803 = vadd.xlane.f32.xlu0 %v2802_v52  ;;  %v2799_v53 = vsel %vm138_vm0, %v6688_v51, 0.0  ;;  %v3407_v52 = vrot.slane %v2721_v46, %v6418_v2 }
 0x99f   :  { %2800 = vadd.xlane.f32.xlu1 %v2799_v53  ;;  %v3391_v53 = vrot.slane %v2714_v0, %v6418_v2 }
 0xa2b   :  { %v2804_v56 = vpop.xlane.xlu0 %2803 }
 0xa2c   :  { %v2806_v57 = vmul.f32 0.03125, %v2804_v56  ;;  %v2801_v48 = vpop.xlane.xlu1 %2800 }
 0xa2d   :  { %v2805_v58 = vmul.f32 0.03125, %v2801_v48  ;;  %v2706_v48 = vcombine.high %v2698_v44, %v2698_v44 }
 0xa2e   :  { %v2808_v42 = vsub.f32 %v6686_v50, %v2806_v57 }
 0xa2f   :  { %v2807_v43 = vsub.f32 %v6688_v51, %v2805_v58  ;;  %v2735_v58 = vrot.slane %v2707_v47, %v6413_v60 }
 0xa30   :  { %v2810_v59 = vmul.f32 %v2808_v42, %v2808_v42 }
 0xa31   :  { %v2809_v62 = vmul.f32 %v2807_v43, %v2807_v43  ;;  %v3411_v3 = vrot.slane %v2735_v58, %v6418_v2 }
 0xa32   :  { %v2814_v61 = vsel %vm138_vm0, %v2810_v59, 0.0 }
 0xa33   :  { %2815 = vadd.xlane.f32.xlu0 %v2814_v61  ;;  %v2811_v63 = vsel %vm138_vm0, %v2809_v62, 0.0 }
 0xa34   :  { %2812 = vadd.xlane.f32.xlu1 %v2811_v63  ;;  %v2728_v63 = vrot.slane %v2706_v48, %v6413_v60 }
 0xac0   :  { %v2816_v4 = vpop.xlane.xlu0 %2815 }
 0xac1   :  { %v2818_v5 = vmul.f32 0.03125, %v2816_v4  ;;  %v2813_v6 = vpop.xlane.xlu1 %2812 }
 0xac2   :  { %v2817_v7 = vmul.f32 0.03125, %v2813_v6 }
 0xac3   :  { %v2820_v8 = vadd.f32 1e-05, %v2818_v5 }
 0xac4   :  { %v2819_v9 = vadd.f32 1e-05, %v2817_v7  ;;  %v3395_v7 = vrot.slane %v2728_v63, %v6418_v2 }
 0xac5   :  { %6214 = vrsqrt.f32 %v2820_v8 }
 0xac6   :  { %6216 = vrsqrt.f32 %v2819_v9 }
 0xacf   :  { %v6215_v10 = vpop.eup %6214 }
 0xad0   :  { %v6217_v12 = vpop.eup %6216  ;;  %v2824_v13 = vmul.f32 %v6215_v10, %v2808_v42 }
 0xad1   :  { %v2823_v14 = vmul.f32 %v6217_v12, %v2807_v43  ;;  %v2737_v43 = vcombine.high %v2721_v46, %v2721_v46  ;;  %v2736_v12 = vcombine.high %v2714_v0, %v2714_v0 }
 0xad2   :  { %v2830_v16 = vmul.f32 %v5527_v11, %v2824_v13  ;;  %v2739_v13 = vcombine.high %v2735_v58, %v2735_v58 }
 0xad3   :  { %v2829_v17 = vmul.f32 %v5527_v11, %v2823_v14  ;;  %v3415_v5 = vrot.slane %v2737_v43, %v6418_v2 }
 0xad4   :  { %v2836_v18 = vadd.f32 %v5528_v15, %v2830_v16 }
 0xad5   :  { %v2835_v19 = vadd.f32 %v5528_v15, %v2829_v17 }
 0xad7   :  { %v6118_v20 = vpack.c.bf16 %v2836_v18, %v2835_v19  ;;  %v3399_v18 = vrot.slane %v2736_v12, %v6418_v2  ;;  %v3419_v19 = vrot.slane %v2739_v13, %v6418_v2 }
 0xad9   :  { %6120 = vmatprep.subr.msk.bf16.mxu0 %vm6348_vm1, %v6118_v20 }
 0xada   :  { %6123 = vmatpush3.bf16.xpose.msk.msra.mxu0 %vm6348_vm1, %v6118_v20 }
 0xadb   :  { %5954 = vmatprep.subr.mxu0 %v6282_v49 }
 0xae1   :  { %5917 = vmatmul.mubr.msk.f32.vlgmr.msra.gmra.mrb[26].mxu0 %vm138_vm0, %v5496_v21 }
 0xae2   :  { %5919 = vmatprep.mubr.msk.f32.mxu0 %vm138_vm0, %v5497_v22 }
 0xae5   :  { %5920 = vmatmul.mubr.msk.f32.gmra.mrb[28].mxu0 %vm138_vm0, %v5498_v23 }
 0xae6   :  { %5922 = vmatprep.mubr.msk.f32.mxu0 %vm138_vm0, %v5499_v54 }
 0xae9   :  { %5923 = vmatmul.mubr.msk.f32.gmra.mrb[30].mxu0 %vm138_vm0, %v5500_v55 }
 0xaea   :  { %5925 = vmatprep.mubr.msk.f32.mxu0 %vm138_vm0, %v5501_v24  ;;  %v2738_v24 = vcombine.high %v2728_v63, %v2728_v63 }
 0xaed   :  { %5926 = vmatmul.mubr.msk.f32.gmra.mrb[32].mxu0 %vm138_vm0, %v5502_v25 }
 0xaee   :  { %5928 = vmatprep.mubr.msk.f32.mxu0 %vm138_vm0, %v5503_v35 }
 0xaf1   :  { %5929 = vmatmul.mubr.msk.f32.gmra.mrb[34].mxu0 %vm138_vm0, %v5504_v36 }
 0xaf2   :  { %5931 = vmatprep.mubr.msk.f32.mxu0 %vm138_vm0, %v5505_v37 }
 0xaf5   :  { %5932 = vmatmul.mubr.msk.f32.gmra.mrb[36].mxu0 %vm138_vm0, %v5506_v38 }
 0xaf6   :  { %5956 = vmatprep.mubr.msk.f32.mxu0 %vm6283_vm2, %v6282_v49 }
 0xbb4   :  { %v5918_v26 = vpop.f32.mrb[26].mxu0 }
 0xbb5   :  { %v2945_v27 = vpop.f32.mrb[27].mxu0 }
 0xbb6   :  { %3004 = vxpose.xlu0.b32.start.end [1/1] (short) (narrow) %v2945_v27, 16 }
 0xbb8   :  { %v5921_v28 = vpop.f32.mrb[28].mxu0 }
 0xbb9   :  { %v2955_v29 = vpop.f32.mrb[29].mxu0 }
 0xbbc   :  { %v5924_v30 = vpop.f32.mrb[30].mxu0 }
 0xbbd   :  { %3164 = vxpose.xlu0.b32.start.end [1/1] (short) (narrow) %v5924_v30, 16  ;;  %v2965_v32 = vpop.f32.mrb[31].mxu0 }
 0xbbe   :  { %3132 = vxpose.xlu1.b32.start.end [1/1] (short) (narrow) %v2965_v32, 16 }
 0xbc0   :  { %v5927_v33 = vpop.f32.mrb[32].mxu0 }
 0xbc1   :  { %v2975_v34 = vpop.f32.mrb[33].mxu0 }
 0xbc2   :  { %3196 = vxpose.xlu0.b32.start.end [1/1] (short) (narrow) %v2975_v34, 16 }
 0xbc3   :  { %3036 = vxpose.xlu1.b32.start.end [1/1] (short) (narrow) %v5918_v26, 16 }
 0xbc4   :  { %v5930_v35 = vpop.f32.mrb[34].mxu0 }
 0xbc5   :  { %v2985_v36 = vpop.f32.mrb[35].mxu0 }
 0xbc7   :  { %3228 = vxpose.xlu0.b32.start.end [1/1] (short) (narrow) %v5927_v33, 16 }
 0xbc8   :  { %3068 = vxpose.xlu1.b32.start.end [1/1] (short) (narrow) %v2955_v29, 16  ;;  %v6816_v37 = vpop.f32.mrb[36].mxu0 }
 0xbc9   :  { %v6818_v38 = vpop.f32.mrb[37].mxu0 }
 0xbcd   :  { %3100 = vxpose.xlu1.b32.start.end [1/1] (short) (narrow) %v5921_v28, 16  ;;  %v3403_v28 = vrot.slane %v2738_v24, %v6418_v2 }
 0xc36   :  { %v3020_v45 = vpop.trf.xlu0 }
 0xc37   :  { %v3448_v59 = vadd.f32 %v3391_v53, %v3020_v45 }
 0xc3a   :  { %v3021_v1 = vpop.trf.xlu0 }
 0xc3b   :  { %v3449_v6 = vadd.f32 %v3391_v53, %v3021_v1 }
 0xc3e   :  { %v3180_v56 = vpop.trf.xlu0  ;;  %v3148_v57 = vpop.trf.xlu1 }
 0xc3f   :  { %v3456_v42 = vadd.f32 %v3407_v52, %v3148_v57  ;;  %v3458_v10 = vadd.f32 %v3411_v3, %v3180_v56 }
 0xc41   :  { %5935 = vmatpush3.xpose.msk.msra.mxu1 %vm812_vm3, %v3456_v42 }
 0xc42   :  { %v3181_v62 = vpop.trf.xlu0  ;;  %v3149_v61 = vpop.trf.xlu1  ;;  %5939 = vmatprep.subr.mxu1 %v6282_v49 }
 0xc43   :  { %v3457_v4 = vadd.f32 %v3407_v52, %v3149_v61  ;;  %v3459_v17 = vadd.f32 %v3411_v3, %v3181_v62 }
 0xc44   :  { %5937 = vmatmul.mubr.msk.f32.vlgmr.msra.gmra.mrb[30].mxu1 %vm812_vm3, %v3448_v59 }
 0xc45   :  { %5940 = vmatpush3.xpose.msk.msra.mxu1 %vm812_vm3, %v3457_v4  ;;  %5941 = vmatprep.mubr.msk.f32.mxu1 %vm6283_vm2, %v6282_v49 }
 0xc46   :  { %v3052_v8 = vpop.trf.xlu1  ;;  %v3212_v9 = vpop.trf.xlu0  ;;  %5944 = vmatprep.subr.mxu1 %v6282_v49 }
 0xc47   :  { %v3460_v11 = vadd.f32 %v3415_v5, %v3212_v9  ;;  %v3450_v14 = vadd.f32 %v3395_v7, %v3052_v8 }
 0xc48   :  { %5942 = vmatmul.mubr.msk.f32.vlgmr.msra.gmra.mrb[32].mxu1 %vm812_vm3, %v3449_v6 }
 0xc49   :  { %5945 = vmatpush3.xpose.msk.msra.mxu1 %vm812_vm3, %v3458_v10  ;;  %5955 = vmatpush3.xpose.msk.msra.mxu0 %vm812_vm3, %v3460_v11 }
 0xc4a   :  { %v3053_v15 = vpop.trf.xlu1  ;;  %5946 = vmatprep.mubr.msk.f32.mxu1 %vm6283_vm2, %v6282_v49  ;;  %5949 = vmatprep.subr.mxu1 %v6282_v49  ;;  %v3213_v16 = vpop.trf.xlu0 }
 0xc4b   :  { %5964 = vmatprep.subr.mxu0 %v6282_v49  ;;  %v3461_v20 = vadd.f32 %v3415_v5, %v3213_v16  ;;  %v3451_v21 = vadd.f32 %v3395_v7, %v3053_v15 }
 0xc4c   :  { %5947 = vmatmul.mubr.msk.f32.vlgmr.msra.gmra.mrb[34].mxu1 %vm812_vm3, %v3450_v14 }
 0xc4d   :  { %5950 = vmatpush3.xpose.msk.msra.mxu1 %vm812_vm3, %v3459_v17  ;;  %5951 = vmatprep.mubr.msk.f32.mxu1 %vm6283_vm2, %v6282_v49 }
 0xc4e   :  { %v3084_v22 = vpop.trf.xlu1  ;;  %5959 = vmatprep.subr.mxu1 %v6282_v49  ;;  %v3244_v23 = vpop.trf.xlu0 }
 0xc4f   :  { %v3452_v54 = vadd.f32 %v3399_v18, %v3084_v22  ;;  %v3462_v55 = vadd.f32 %v3419_v19, %v3244_v23 }
 0xc50   :  { %5952 = vmatmul.mubr.msk.f32.vlgmr.msra.gmra.mrb[36].mxu1 %vm812_vm3, %v3451_v21 }
 0xc51   :  { %5957 = vmatmul.mubr.msk.f32.vlgmr.msra.gmra.mrb[38].mxu0 %vm812_vm3, %v3452_v54  ;;  %5960 = vmatpush3.xpose.msk.msra.mxu1 %vm812_vm3, %v3461_v20 }
 0xc52   :  { %v3085_v25 = vpop.trf.xlu1  ;;  %5961 = vmatprep.mubr.msk.f32.mxu1 %vm6283_vm2, %v6282_v49  ;;  %5965 = vmatpush3.xpose.msk.msra.mxu0 %vm812_vm3, %v3462_v55  ;;  %v3245_v26 = vpop.trf.xlu0 }
 0xc53   :  { %v3453_v27 = vadd.f32 %v3399_v18, %v3085_v25  ;;  %v3463_v29 = vadd.f32 %v3419_v19, %v3245_v26  ;;  %5966 = vmatprep.mubr.msk.f32.mxu0 %vm6283_vm2, %v6282_v49  ;;  %5969 = vmatprep.subr.mxu1 %v6282_v49 }
 0xc54   :  { %5974 = vmatprep.subr.mxu0 %v6282_v49 }
 0xc55   :  { %5962 = vmatmul.mubr.msk.f32.vlgmr.msra.gmra.mrb[38].mxu1 %vm812_vm3, %v3453_v27 }
 0xc56   :  { %v3116_v30 = vpop.trf.xlu1  ;;  %5970 = vmatpush3.xpose.msk.msra.mxu1 %vm812_vm3, %v3463_v29  ;;  %5971 = vmatprep.mubr.msk.f32.mxu1 %vm6283_vm2, %v6282_v49 }
 0xc57   :  { %v3454_v32 = vadd.f32 %v3403_v28, %v3116_v30  ;;  %5979 = vmatprep.subr.mxu1 %v6282_v49 }
 0xc59   :  { %5967 = vmatmul.mubr.msk.f32.vlgmr.msra.gmra.mrb[40].mxu0 %vm812_vm3, %v3454_v32 }
 0xc5a   :  { %v3117_v33 = vpop.trf.xlu1  ;;  %5976 = vmatprep.mubr.msk.f32.mxu0 %vm6283_vm2, %v6282_v49 }
 0xc5b   :  { %v3455_v34 = vadd.f32 %v3403_v28, %v3117_v33 }
 0xc5d   :  { %5972 = vmatmul.mubr.msk.f32.vlgmr.msra.gmra.mrb[40].mxu1 %vm812_vm3, %v3455_v34 }
 0xc5e   :  { %5981 = vmatprep.mubr.msk.f32.mxu1 %vm6283_vm2, %v6282_v49 }
 0xd17   :  { %v3544_v39 = vpop.f32.mrb[30].mxu1 }
 0xd18   :  { %v5938_v40 = vpop.f32.mrb[31].mxu1  ;;  %v4080_v41 = vsel %vm812_vm3, %v3544_v39, -inf }
 0xd19   :  { %4081 = vmax.xlane.f32.xlu0 %v4080_v41 }
 0xd1b   :  { %v3620_v44 = vpop.f32.mrb[32].mxu1 }
 0xd1c   :  { %v5943_v45 = vpop.f32.mrb[33].mxu1  ;;  %v4083_v46 = vsel %vm812_vm3, %v3620_v44, -inf }
 0xd1d   :  { %4084 = vmax.xlane.f32.xlu1 %v4083_v46 }
 0xd1f   :  { %v3696_v0 = vpop.f32.mrb[34].mxu1 }
 0xd20   :  { %v5948_v1 = vpop.f32.mrb[35].mxu1  ;;  %v4086_v43 = vsel %vm812_vm3, %v3696_v0, -inf }
 0xd23   :  { %v3772_v47 = vpop.f32.mrb[36].mxu1 }
 0xd24   :  { %v3848_v52 = vpop.f32.mrb[38].mxu0  ;;  %v4089_v53 = vsel %vm812_vm3, %v3772_v47, -inf  ;;  %v5953_v56 = vpop.f32.mrb[37].mxu1 }
 0xd25   :  { %4090 = vmax.xlane.f32.xlu0 %v4089_v53  ;;  %v4092_v57 = vsel %vm812_vm3, %v3848_v52, -inf  ;;  %v5958_v48 = vpop.f32.mrb[39].mxu0 }
 0xd26   :  { %4093 = vmax.xlane.f32.xlu1 %v4092_v57 }
 0xd28   :  { %v3924_v58 = vpop.f32.mrb[38].mxu1 }
 0xd29   :  { %v4095_v42 = vsel %vm812_vm3, %v3924_v58, -inf  ;;  %v5963_v59 = vpop.f32.mrb[39].mxu1 }
 0xd2a   :  { %4096 = vmax.xlane.f32.xlu0 %v4095_v42  ;;  %4087 = vmax.xlane.f32.xlu1 %v4086_v43 }
 0xd2c   :  { %v4000_v62 = vpop.f32.mrb[40].mxu0 }
 0xd2d   :  { %v4098_v61 = vsel %vm812_vm3, %v4000_v62, -inf  ;;  %v5968_v63 = vpop.f32.mrb[41].mxu0 }
 0xd2e   :  { %4099 = vmax.xlane.f32.xlu1 %v4098_v61 }
 0xd30   :  { %v4076_v3 = vpop.f32.mrb[40].mxu1 }
 0xd31   :  { %v4101_v4 = vsel %vm812_vm3, %v4076_v3, -inf  ;;  %v5973_v5 = vpop.f32.mrb[41].mxu1 }
 0xd32   :  { %4102 = vmax.xlane.f32.xlu0 %v4101_v4 }
 0xd5f   :  { %3292 = vxpose.xlu0.b32.start.end [1/1] (short) (narrow) %v5930_v35, 16 }
 0xd61   :  { %3260 = vxpose.xlu1.b32.start.end [1/1] (short) (narrow) %v2985_v36, 16 }
 0xda6   :  { %v4082_v6 = vpop.xlane.xlu0 %4081 }
 0xda7   :  { %v4104_v7 = vsub.f32 %v3544_v39, %v4082_v6 }
 0xda9   :  { %v4112_v8 = vmul.f32 1.442695, %v4104_v7 }
 0xdaa   :  { %v4085_v9 = vpop.xlane.xlu1 %4084 }
 0xdab   :  { %6218 = vpow2.f32 %v4112_v8  ;;  %v4105_v10 = vsub.f32 %v3620_v44, %v4085_v9 }
 0xdad   :  { %v4114_v11 = vmul.f32 1.442695, %v4105_v10 }
 0xdaf   :  { %6220 = vpow2.f32 %v4114_v11 }
 0xdb2   :  { %v4091_v12 = vpop.xlane.xlu0 %4090 }
 0xdb3   :  { %v4107_v13 = vsub.f32 %v3772_v47, %v4091_v12  ;;  %v4094_v14 = vpop.xlane.xlu1 %4093  ;;  %v5493_v47 = vld.sshfl [vmem:[%s7084_s2 + $0x28] sm:$0x33 pattern:$0x75316420] }
 0xdb4   :  { %v4108_v15 = vsub.f32 %v3848_v52, %v4094_v14  ;;  %v6864_v52 = vrot.slane %v5493_v47, %v6413_v60 }
 0xdb5   :  { %v6828_v16 = vpop.eup %6218  ;;  %v4118_v17 = vmul.f32 1.442695, %v4107_v13 }
 0xdb6   :  { %v4120_v18 = vmul.f32 1.442695, %v4108_v15  ;;  %v4128_v19 = vsel %vm812_vm3, %v6828_v16, 0.0  ;;  %v3423_v53 = vrot.slane %v6864_v52, %v6418_v2 }
 0xdb7   :  { %6222 = vpow2.f32 %v4118_v17  ;;  %v4097_v20 = vpop.xlane.xlu0 %4096  ;;  %v4088_v21 = vpop.xlane.xlu1 %4087  ;;  %4129 = vadd.xlane.f32.xlu1 %v4128_v19 }
 0xdb8   :  { %6224 = vpow2.f32 %v4120_v18  ;;  %v4109_v22 = vsub.f32 %v3924_v58, %v4097_v20  ;;  %v4106_v23 = vsub.f32 %v3696_v0, %v4088_v21 }
 0xdb9   :  { %v6832_v54 = vpop.eup %6220 }
 0xdba   :  { %v4122_v55 = vmul.f32 1.442695, %v4109_v22  ;;  %v4116_v24 = vmul.f32 1.442695, %v4106_v23  ;;  %v4131_v25 = vsel %vm812_vm3, %v6832_v54, 0.0 }
 0xdbb   :  { %4132 = vadd.xlane.f32.xlu0 %v4131_v25  ;;  %v4100_v26 = vpop.xlane.xlu1 %4099 }
 0xdbc   :  { %6226 = vpow2.f32 %v4122_v55  ;;  %v4110_v27 = vsub.f32 %v4000_v62, %v4100_v26  ;;  %v2747_v62 = vcombine.high %v5493_v47, %v5493_v47 }
 0xdbd   :  { %6228 = vpow2.f32 %v4116_v24 }
 0xdbe   :  { %v4124_v28 = vmul.f32 1.442695, %v4110_v27  ;;  %v6873_v63 = vrot.slane %v2747_v62, %v6413_v60 }
 0xdbf   :  { %v4103_v29 = vpop.xlane.xlu0 %4102 }
 0xdc0   :  { %6230 = vpow2.f32 %v4124_v28  ;;  %v4111_v30 = vsub.f32 %v4076_v3, %v4103_v29  ;;  %v3427_v3 = vrot.slane %v6873_v63, %v6418_v2 }
 0xdc1   :  { %v6836_v32 = vpop.eup %6222 }
 0xdc2   :  { %v6838_v33 = vpop.eup %6224  ;;  %v4126_v34 = vmul.f32 1.442695, %v4111_v30  ;;  %v4137_v35 = vsel %vm812_vm3, %v6836_v32, 0.0 }
 0xdc3   :  { %4138 = vadd.xlane.f32.xlu0 %v4137_v35  ;;  %v4140_v36 = vsel %vm812_vm3, %v6838_v33, 0.0 }
 0xdc4   :  { %6232 = vpow2.f32 %v4126_v34  ;;  %4141 = vadd.xlane.f32.xlu1 %v4140_v36 }
 0xdc6   :  { %v6844_v39 = vpop.eup %6226 }
 0xdc7   :  { %v6846_v40 = vpop.eup %6228  ;;  %v4143_v41 = vsel %vm812_vm3, %v6844_v39, 0.0 }
 0xdc8   :  { %4144 = vadd.xlane.f32.xlu0 %v4143_v41  ;;  %v4134_v44 = vsel %vm812_vm3, %v6846_v40, 0.0 }
 0xdc9   :  { %4135 = vadd.xlane.f32.xlu1 %v4134_v44  ;;  %v2762_v44 = vcombine.high %v6864_v52, %v6864_v52 }
 0xdca   :  { %v6852_v45 = vpop.eup %6230 }
 0xdcb   :  { %v4146_v46 = vsel %vm812_vm3, %v6852_v45, 0.0 }
 0xdcd   :  { %4147 = vadd.xlane.f32.xlu1 %v4146_v46  ;;  %v3431_v46 = vrot.slane %v2762_v44, %v6418_v2  ;;  %v5511_v44 = vld [vmem:[%s7083_s1 + $0x180] sm:$0xff] }
 0xdce   :  { %v6856_v0 = vpop.eup %6232 }
 0xdcf   :  { %v4149_v1 = vsel %vm812_vm3, %v6856_v0, 0.0 }
 0xdd0   :  { %4150 = vadd.xlane.f32.xlu0 %v4149_v1 }
 0xddf   :  { %v3308_v42 = vpop.trf.xlu0 }
 0xde0   :  { %v3466_v5 = vadd.f32 %v3427_v3, %v3308_v42  ;;  %v5508_v42 = vld [vmem:[%s7083_s1 + $0x168] sm:$0xff] }
 0xde1   :  { %v3276_v56 = vpop.trf.xlu1 }
 0xde2   :  { %v3464_v57 = vadd.f32 %v3423_v53, %v3276_v56 }
 0xde3   :  { %v3309_v43 = vpop.trf.xlu0 }
 0xde4   :  { %5975 = vmatpush3.msra.mxu0 %v3464_v57  ;;  %v3467_v8 = vadd.f32 %v3427_v3, %v3309_v43  ;;  %v5509_v43 = vld [vmem:[%s7083_s1 + $0x170] sm:$0xff] }
 0xde5   :  { %v3277_v48 = vpop.trf.xlu1  ;;  %5984 = vmatprep.subr.mxu0 %v6282_v49 }
 0xde6   :  { %v3465_v58 = vadd.f32 %v3423_v53, %v3277_v48 }
 0xde8   :  { %5980 = vmatpush3.msra.mxu1 %v3465_v58  ;;  %v5507_v58 = vld [vmem:[%s7083_s1 + $0x160] sm:$0xff] }
 0xde9   :  { %5989 = vmatprep.subr.mxu1 %v6282_v49 }
 0xdfd   :  { %3324 = vxpose.xlu0.b32.start.end [1/1] (short) (narrow) %v6818_v38, 16 }
 0xe00   :  { %3356 = vxpose.xlu1.b32.start.end [1/1] (short) (narrow) %v6816_v37, 16 }
 0xe44   :  { %v4130_v59 = vpop.xlane.xlu1 %4129 }
 0xe45   :  { %6234 = vrcp.f32 %v4130_v59 }
 0xe48   :  { %v4133_v61 = vpop.xlane.xlu0 %4132 }
 0xe49   :  { %6236 = vrcp.f32 %v4133_v61 }
 0xe4f   :  { %v6235_v4 = vpop.eup %6234 }
 0xe50   :  { %v4153_v6 = vmul.f32 %v6235_v4, %v6828_v16  ;;  %v4139_v38 = vpop.xlane.xlu0 %4138 }
 0xe51   :  { %6238 = vrcp.f32 %v4139_v38  ;;  %v4142_v37 = vpop.xlane.xlu1 %4141 }
 0xe52   :  { %5977 = vmatmul.mubr.msk.f32.vlgmr.msra.gmra.mrb[42].mxu0 %vm812_vm3, %v4153_v6  ;;  %6240 = vrcp.f32 %v4142_v37  ;;  %v5338_v21 = vsel %vm812_vm3, %v4153_v6, 0.0 }
 0xe53   :  { %v6237_v7 = vpop.eup %6236  ;;  %5985 = vmatpush3.msra.mxu0 %v3466_v5  ;;  %5986 = vmatprep.mubr.msk.f32.mxu0 %vm6283_vm2, %v6282_v49 }
 0xe54   :  { %v4155_v60 = vmul.f32 %v6237_v7, %v6832_v54  ;;  %5994 = vmatprep.subr.mxu0 %v6282_v49 }
 0xe55   :  { %v4145_v9 = vpop.xlane.xlu0 %4144 }
 0xe56   :  { %6242 = vrcp.f32 %v4145_v9  ;;  %v4136_v10 = vpop.xlane.xlu1 %4135  ;;  %5982 = vmatmul.mubr.msk.f32.vlgmr.msra.gmra.mrb[42].mxu1 %vm812_vm3, %v4155_v60  ;;  %v5345_v26 = vsel %vm812_vm3, %v4155_v60, 0.0 }
 0xe57   :  { %6244 = vrcp.f32 %v4136_v10  ;;  %5990 = vmatpush3.msra.mxu1 %v3467_v8  ;;  %5991 = vmatprep.mubr.msk.f32.mxu1 %vm6283_vm2, %v6282_v49 }
 0xe58   :  { %5999 = vmatprep.subr.mxu1 %v6282_v49 }
 0xe5a   :  { %v4148_v11 = vpop.xlane.xlu1 %4147 }
 0xe5b   :  { %v6239_v12 = vpop.eup %6238  ;;  %6246 = vrcp.f32 %v4148_v11 }
 0xe5c   :  { %v4159_v13 = vmul.f32 %v6239_v12, %v6836_v32  ;;  %v6241_v15 = vpop.eup %6240 }
 0xe5d   :  { %v4151_v14 = vpop.xlane.xlu0 %4150  ;;  %v4161_v18 = vmul.f32 %v6241_v15, %v6838_v33 }
 0xe5e   :  { %6248 = vrcp.f32 %v4151_v14  ;;  %5992 = vmatmul.mubr.msk.f32.vlgmr.msra.gmra.mrb[44].mxu1 %vm812_vm3, %v4159_v13  ;;  %v5346_v54 = vsel %vm812_vm3, %v4159_v13, 0.0 }
 0xe5f   :  { %6001 = vmatprep.mubr.msk.f32.mxu1 %vm6283_vm2, %v6282_v49  ;;  %v5341_v24 = vsel %vm812_vm3, %v4161_v18, 0.0  ;;  %v5347_v30 = vadd.f32 %v5346_v54, %v5345_v26 }
 0xe60   :  { %v6243_v16 = vpop.eup %6242 }
 0xe61   :  { %v6245_v17 = vpop.eup %6244  ;;  %v4163_v20 = vmul.f32 %v6243_v16, %v6844_v39 }
 0xe62   :  { %v4157_v19 = vmul.f32 %v6245_v17, %v6846_v40 }
 0xe63   :  { %v5348_v27 = vsel %vm812_vm3, %v4163_v20, 0.0 }
 0xe64   :  { %v5339_v22 = vsel %vm812_vm3, %v4157_v19, 0.0  ;;  %5987 = vmatmul.mubr.msk.f32.vlgmr.msra.gmra.mrb[44].mxu0 %vm812_vm3, %v4157_v19  ;;  %v5349_v35 = vadd.f32 %v5348_v27, %v5347_v30 }
 0xe65   :  { %v6247_v23 = vpop.eup %6246  ;;  %v5340_v55 = vadd.f32 %v5339_v22, %v5338_v21  ;;  %5996 = vmatprep.mubr.msk.f32.mxu0 %vm6283_vm2, %v6282_v49 }
 0xe66   :  { %v4165_v25 = vmul.f32 %v6247_v23, %v6852_v45  ;;  %v2763_v45 = vcombine.high %v6873_v63, %v6873_v63 }
 0xe67   :  { %v5342_v28 = vadd.f32 %v5341_v24, %v5340_v55 }
 0xe68   :  { %v6249_v29 = vpop.eup %6248  ;;  %v5343_v32 = vsel %vm812_vm3, %v4165_v25, 0.0  ;;  %v3435_v1 = vrot.slane %v2763_v45, %v6418_v2 }
 0xe69   :  { %v4167_v33 = vmul.f32 %v6249_v29, %v6856_v0  ;;  %v5344_v34 = vadd.f32 %v5343_v32, %v5342_v28 }
 0xe6b   :  { %v5350_v36 = vsel %vm812_vm3, %v4167_v33, 0.0  ;;  %v5352_v39 = vmul.f32 0.25, %v5344_v34 }
 0xe6c   :  { %v5351_v40 = vadd.f32 %v5350_v36, %v5349_v35 }
 0xe6d   :  { %5397 = vst.msk [vmem:[#allocation2] sm:$0xff] %vm812_vm3, %v5352_v39 }
 0xe6e   :  { %v5353_v41 = vmul.f32 0.25, %v5351_v40 }
 0xe70   :  { %5398 = vst.msk [vmem:[#allocation2 + $0x8] sm:$0xff] %vm812_vm3, %v5353_v41 }
 0xe7d   :  { %v3340_v0 = vpop.trf.xlu0 }
 0xe7e   :  { %v3468_v47 = vadd.f32 %v3431_v46, %v3340_v0 }
 0xe80   :  { %5995 = vmatpush3.msra.mxu0 %v3468_v47  ;;  %v3372_v53 = vpop.trf.xlu1 }
 0xe81   :  { %v3341_v56 = vpop.trf.xlu0  ;;  %5997 = vmatmul.mubr.msk.f32.vlgmr.msra.gmra.mrb[46].mxu0 %vm812_vm3, %v4161_v18  ;;  %v3470_v57 = vadd.f32 %v3435_v1, %v3372_v53  ;;  %6004 = vmatprep.subr.mxu0 %v6282_v49 }
 0xe82   :  { %v3469_v48 = vadd.f32 %v3431_v46, %v3341_v56  ;;  %6006 = vmatprep.mubr.msk.f32.mxu0 %vm6283_vm2, %v6282_v49  ;;  %v5514_v46 = vld [vmem:[%s7083_s1 + $0x198] sm:$0xff] }
 0xe83   :  { %6005 = vmatpush3.msra.mxu0 %v3470_v57 }
 0xe84   :  { %6000 = vmatpush3.msra.mxu1 %v3469_v48  ;;  %v3373_v52 = vpop.trf.xlu1  ;;  %6014 = vmatprep.subr.mxu0 %v5507_v58 }
 0xe85   :  { %6002 = vmatmul.mubr.msk.f32.vlgmr.msra.gmra.mrb[46].mxu1 %vm812_vm3, %v4163_v20  ;;  %6007 = vmatmul.mubr.msk.f32.vlgmr.msra.gmra.mrb[48].mxu0 %vm812_vm3, %v4165_v25  ;;  %v3471_v2 = vadd.f32 %v3435_v1, %v3373_v52 }
 0xe86   :  { %6009 = vmatprep.subr.mxu1 %v6282_v49  ;;  %6011 = vmatprep.mubr.msk.f32.mxu1 %vm6283_vm2, %v6282_v49  ;;  %v5510_v49 = vld [vmem:[%s7083_s1 + $0x178] sm:$0xff] }
 0xe87   :  { %6010 = vmatpush3.msra.mxu1 %v3471_v2  ;;  %6015 = vmatpush3.msra.mxu0 %v5507_v58 }
 0xe88   :  { %6019 = vmatprep.subr.mxu1 %v5508_v42  ;;  %6024 = vmatprep.subr.mxu0 %v5509_v43 }
 0xe89   :  { %6012 = vmatmul.mubr.msk.f32.vlgmr.msra.gmra.mrb[48].mxu1 %vm812_vm3, %v4167_v33  ;;  %v5575_v33 = vld [vmem:[%s7084_s2 + $0x1c] ss:$0 sm:$0xff] }
 0xe8a   :  { %6020 = vmatpush3.msra.mxu1 %v5508_v42 }
 0xe8b   :  { %6029 = vmatprep.subr.mxu1 %v5510_v49 }
 0xf25   :  { %v4237_v59 = vpop.f32.mrb[42].mxu0 }
 0xf26   :  { %v5978_v62 = vpop.f32.mrb[43].mxu0  ;;  %6016 = vmatprep.mubr.msk.f32.mxu0 %vm812_vm3, %v4237_v59 }
 0xf27   :  { %v5517_v62 = vld [vmem:[%s7083_s1 + $0x1b0] sm:$0xff] }
 0xf29   :  { %v4310_v61 = vpop.f32.mrb[42].mxu1 }
 0xf2a   :  { %v5983_v63 = vpop.f32.mrb[43].mxu1  ;;  %6017 = vmatmul.mubr.msk.f32.vlgmr.msra.gmra.mrb[50].mxu0 %vm812_vm3, %v4310_v61  ;;  %v5518_v61 = vld [vmem:[%s7083_s1 + $0x1b8] sm:$0xff] }
 0xf2b   :  { %6025 = vmatpush3.msra.mxu0 %v5509_v43  ;;  %v5515_v43 = vld [vmem:[%s7083_s1 + $0x1a0] sm:$0xff]  ;;  %v6142_v63 = vpack.c.bf16 %v5518_v61, %v5517_v62 }
 0xf31   :  { %v4456_v3 = vpop.f32.mrb[44].mxu1 }
 0xf32   :  { %v5993_v4 = vpop.f32.mrb[45].mxu1 }
 0xf33   :  { %v5520_v4 = vld [vmem:[%s7083_s1 + $0x1c8] sm:$0xff] }
 0xf37   :  { %v4383_v5 = vpop.f32.mrb[44].mxu0 }
 0xf38   :  { %v5988_v6 = vpop.f32.mrb[45].mxu0  ;;  %6021 = vmatprep.mubr.msk.f32.mxu1 %vm812_vm3, %v4383_v5  ;;  %v5521_v5 = vld [vmem:[%s7083_s1 + $0x1d0] sm:$0xff] }
 0xf39   :  { %6022 = vmatmul.mubr.msk.f32.vlgmr.msra.gmra.mrb[50].mxu1 %vm812_vm3, %v4456_v3  ;;  %v5519_v3 = vld [vmem:[%s7083_s1 + $0x1c0] sm:$0xff] }
 0xf3a   :  { %6030 = vmatpush3.msra.mxu1 %v5510_v49  ;;  %v5516_v49 = vld [vmem:[%s7083_s1 + $0x1a8] sm:$0xff]  ;;  %v6148_v6 = vpack.c.bf16 %v5520_v4, %v5519_v3 }
 0xf3b   :  { %v6136_v59 = vpack.c.bf16 %v5516_v49, %v5515_v43 }
 0xf3c   :  { %6149 = vmatprep.subr.bf16.mxu1 %v6148_v6 }
 0xf54   :  { %v4529_v38 = vpop.f32.mrb[46].mxu0 }
 0xf55   :  { %v5998_v37 = vpop.f32.mrb[47].mxu0  ;;  %6026 = vmatprep.mubr.msk.f32.mxu0 %vm812_vm3, %v4529_v38  ;;  %v5522_v38 = vld [vmem:[%s7083_s1 + $0x1d8] sm:$0xff] }
 0xf56   :  { %v6152_v37 = vpack.c.bf16 %v5522_v38, %v5521_v5 }
 0xf58   :  { %v4602_v7 = vpop.f32.mrb[46].mxu1  ;;  %v4675_v8 = vpop.f32.mrb[48].mxu0 }
 0xf59   :  { %v6003_v60 = vpop.f32.mrb[47].mxu1  ;;  %v6008_v9 = vpop.f32.mrb[49].mxu0  ;;  %6027 = vmatmul.mubr.msk.f32.vlgmr.msra.gmra.mrb[52].mxu0 %vm812_vm3, %v4602_v7  ;;  %6031 = vmatprep.mubr.msk.f32.mxu1 %vm812_vm3, %v4675_v8  ;;  %v5524_v7 = vld [vmem:[%s7083_s1 + $0x1e8] sm:$0xff] }
 0xf5a   :  { %v6156_v8 = vpack.c.bf16 %v5524_v7, %v5523_v31 }
 0xf5c   :  { %v4748_v10 = vpop.f32.mrb[48].mxu1 }
 0xf5d   :  { %v6013_v11 = vpop.f32.mrb[49].mxu1  ;;  %6032 = vmatmul.mubr.msk.f32.vlgmr.msra.gmra.mrb[52].mxu1 %vm812_vm3, %v4748_v10 }
 0xf5e   :  { %6151 = vmatpush3.bf16.msra.mxu1 %v6148_v6 }
 0xf5f   :  { %6153 = vmatprep.subr.bf16.mxu1 %v6152_v37 }
 0xf62   :  { %6155 = vmatpush3.bf16.msra.mxu1 %v6152_v37 }
 0xf63   :  { %6157 = vmatprep.subr.bf16.mxu1 %v6156_v8 }
 0xf66   :  { %6159 = vmatpush3.bf16.msra.mxu1 %v6156_v8 }
 0xffd   :  { %v6018_v12 = vpop.f32.mrb[50].mxu0 }
 0xffe   :  { %v4824_v13 = vpop.f32.mrb[51].mxu0  ;;  %v5083_v15 = vsel %vm138_vm0, %v6018_v12, 0.0 }
 0xfff   :  { %v5076_v18 = vsel %vm138_vm0, %v4824_v13, 0.0 }
0x100c   :  { %v6023_v14 = vpop.f32.mrb[50].mxu1 }
0x100d   :  { %v5084_v16 = vsel %vm138_vm0, %v6023_v14, 0.0  ;;  %v4905_v17 = vpop.f32.mrb[51].mxu1 }
0x100e   :  { %v5085_v19 = vadd.f32 %v5084_v16, %v5083_v15  ;;  %v5077_v20 = vsel %vm138_vm0, %v4905_v17, 0.0  ;;  %v5576_v15 = vld [vmem:[%s7084_s2 + $0x1a] ss:$0 sm:$0xff] }
0x100f   :  { %v5078_v21 = vadd.f32 %v5077_v20, %v5076_v18 }
0x102c   :  { %v6028_v22 = vpop.f32.mrb[52].mxu0 }
0x102d   :  { %v5086_v23 = vsel %vm138_vm0, %v6028_v22, 0.0  ;;  %v4986_v54 = vpop.f32.mrb[53].mxu0 }
0x102e   :  { %v5087_v55 = vadd.f32 %v5086_v23, %v5085_v19  ;;  %v5079_v24 = vsel %vm138_vm0, %v4986_v54, 0.0  ;;  %v5577_v19 = vld [vmem:[%s7084_s2 + $0x1b] ss:$0 sm:$0xff]  ;;  %v5525_v54 = vld [vmem:[%s7083_s1 + $0x1f0] sm:$0xff] }
0x102f   :  { %v5080_v25 = vadd.f32 %v5079_v24, %v5078_v21 }
0x1030   :  { %v6033_v26 = vpop.f32.mrb[52].mxu1 }
0x1031   :  { %v5088_v27 = vsel %vm138_vm0, %v6033_v26, 0.0  ;;  %v5067_v28 = vpop.f32.mrb[53].mxu1 }
0x1032   :  { %v5089_v29 = vadd.f32 %v5088_v27, %v5087_v55  ;;  %v5081_v30 = vsel %vm138_vm0, %v5067_v28, 0.0  ;;  %v5526_v55 = vld [vmem:[%s7083_s1 + $0x1f8] sm:$0xff] }
0x1033   :  { %v5082_v32 = vadd.f32 %v5081_v30, %v5080_v25  ;;  %v6160_v24 = vpack.c.bf16 %v5526_v55, %v5525_v54  ;;  %v5578_v25 = vld [vmem:[%s7085_s3 + $0x1] ss:$0 sm:$0xff] }
0x1034   :  { %v5091_v34 = vadd.f32 %v5089_v29, %v6686_v50  ;;  %v5512_v50 = vld [vmem:[%s7083_s1 + $0x188] sm:$0xff] }
0x1035   :  { %v5090_v35 = vadd.f32 %v5082_v32, %v6688_v51  ;;  %v5513_v51 = vld [vmem:[%s7083_s1 + $0x190] sm:$0xff]  ;;  %v6124_v45 = vpack.c.bf16 %v5512_v50, %v5511_v44  ;;  %6161 = vmatprep.subr.bf16.mxu1 %v6160_v24  ;;  %s6285_s1 = smov [#allocation2]  }
0x1036   :  { %v6958_v36 = vadd.f32 %v5575_v33, %v5091_v34  ;;  %v6130_v0 = vpack.c.bf16 %v5514_v46, %v5513_v51  ;;  %6163 = vmatpush3.bf16.msra.mxu1 %v6160_v24  ;;  %s5406_s3 = sshll.u32 %s6285_s1, 4  ;;  %s5407_s3 = int_to_ptr.vmem [resolvable:$true] %s5406_s3 }
0x1037   :  { %v6960_v39 = vadd.f32 %v5575_v33, %v5090_v35  ;;  %6126 = vmatprep.subr.msk.bf16.mxu0 %vm6348_vm1, %v6124_v45  ;;  %v5591_v33 = vld [vmem:[%s7084_s2 + $0x1d] ss:$0 sm:$0xff]  ;;  %s6258_s29 = scalar_lea.vmem %s5407_s3, 256  ;;  %p6263_p1 = scmp.lt.s32.totalorder %s5407_s3, %s5407_s3 }
0x1038   :  { %v5101_v40 = vsel %vm138_vm0, %v6958_v36, 0.0  ;;  %6129 = vmatpush3.bf16.xpose.msk.msra.mxu0 %vm6348_vm1, %v6124_v45  ;;  %p6259_p0 = scmp.ne.s32.totalorder %s5407_s3, %s6258_s29  ;;  %p6264_p2 = scmp.lt.s32.totalorder %s6258_s29, %s6258_s29 }
0x1039   :  { %5102 = vadd.xlane.f32.xlu1 %v5101_v40  ;;  %v5098_v41 = vsel %vm138_vm0, %v6960_v39, 0.0  ;;  %6132 = vmatprep.subr.msk.bf16.mxu0 %vm6348_vm1, %v6130_v0 }
0x103a   :  { %5099 = vadd.xlane.f32.xlu0 %v5098_v41  ;;  %p6265_p3 = por %p6264_p2, %p6263_p1 }
0x103c   :  { %p6266_p4 = pnand %p6265_p3, %p6259_p0 }
0x1040   :  { %6135 = vmatpush3.bf16.xpose.msk.msra.mxu0 %vm6348_vm1, %v6130_v0 }
0x1041   :  { %6138 = vmatprep.subr.msk.bf16.mxu0 %vm6348_vm1, %v6136_v59 }
0x1048   :  { %6141 = vmatpush3.bf16.xpose.msk.msra.mxu0 %vm6348_vm1, %v6136_v59 }
0x1049   :  { %6144 = vmatprep.subr.msk.bf16.mxu0 %vm6348_vm1, %v6142_v63 }
0x1050   :  { %6147 = vmatpush3.bf16.xpose.msk.msra.mxu0 %vm6348_vm1, %v6142_v63 }
0x10c6   :  { %v5103_v1 = vpop.xlane.xlu1 %5102 }
0x10c7   :  { %v5105_v47 = vmul.f32 0.03125, %v5103_v1  ;;  %v5100_v53 = vpop.xlane.xlu0 %5099 }
0x10c8   :  { %v5104_v56 = vmul.f32 0.03125, %v5100_v53 }
0x10c9   :  { %v5107_v57 = vsub.f32 %v6958_v36, %v5105_v47 }
0x10ca   :  { %v5106_v48 = vsub.f32 %v6960_v39, %v5104_v56 }
0x10cb   :  { %v5109_v52 = vmul.f32 %v5107_v57, %v5107_v57 }
0x10cc   :  { %v5108_v2 = vmul.f32 %v5106_v48, %v5106_v48 }
0x10cd   :  { %v5113_v58 = vsel %vm138_vm0, %v5109_v52, 0.0 }
0x10ce   :  { %5114 = vadd.xlane.f32.xlu0 %v5113_v58  ;;  %v5110_v42 = vsel %vm138_vm0, %v5108_v2, 0.0 }
0x10cf   :  { %5111 = vadd.xlane.f32.xlu1 %v5110_v42 }
0x115b   :  { %v5115_v60 = vpop.xlane.xlu0 %5114 }
0x115c   :  { %v5117_v9 = vmul.f32 0.03125, %v5115_v60  ;;  %v5112_v10 = vpop.xlane.xlu1 %5111 }
0x115d   :  { %v5116_v11 = vmul.f32 0.03125, %v5112_v10 }
0x115e   :  { %v5119_v12 = vadd.f32 1e-05, %v5117_v9 }
0x115f   :  { %v5118_v13 = vadd.f32 1e-05, %v5116_v11 }
0x1160   :  { %6250 = vrsqrt.f32 %v5119_v12 }
0x1161   :  { %6252 = vrsqrt.f32 %v5118_v13 }
0x116a   :  { %v6251_v14 = vpop.eup %6250 }
0x116b   :  { %v6253_v16 = vpop.eup %6252  ;;  %v5123_v17 = vmul.f32 %v6251_v14, %v5107_v57 }
0x116c   :  { %v5122_v18 = vmul.f32 %v6253_v16, %v5106_v48 }
0x116d   :  { %v5129_v20 = vmul.f32 %v5576_v15, %v5123_v17 }
0x116e   :  { %v5128_v21 = vmul.f32 %v5576_v15, %v5122_v18 }
0x116f   :  { %v5135_v23 = vadd.f32 %v5577_v19, %v5129_v20 }
0x1170   :  { %v5134_v22 = vadd.f32 %v5577_v19, %v5128_v21 }
0x1172   :  { %6050 = vmatprep.mubr.msk.f32.mxu0 %vm138_vm0, %v5134_v22 }
0x1173   :  { %6051 = vmatmul.mubr.msk.f32.vlgmr.msra.gmra.mrb[54].mxu0 %vm138_vm0, %v5135_v23 }
0x1246   :  { %v6052_v26 = vpop.f32.mrb[54].mxu0 }
0x1247   :  { %v5244_v27 = vadd.f32 %v6052_v26, %v5578_v25  ;;  %v5238_v28 = vpop.f32.mrb[55].mxu0 }
0x1248   :  { %v5239_v29 = vadd.f32 %v5578_v25, %v5238_v28 }
0x1249   :  { %v5248_v32 = vmax.f32 %v5244_v27, 0.0 }
0x124a   :  { %v5247_v30 = vmax.f32 %v5239_v29, 0.0 }
0x124c   :  { %6069 = vmatprep.mubr.msk.f32.mxu1 %vm2590_vm4, %v5247_v30 }
0x124d   :  { %6070 = vmatmul.mubr.msk.f32.vlgmr.msra.gmra.mrb[54].mxu1 %vm2590_vm4, %v5248_v32 }
0x1320   :  { %v6071_v34 = vpop.f32.mrb[54].mxu1 }
0x1321   :  { %v5331_v35 = vadd.f32 %v6071_v34, %v6958_v36  ;;  %v5321_v40 = vpop.f32.mrb[55].mxu1 }
0x1322   :  { %v5330_v41 = vadd.f32 %v5321_v40, %v6960_v39 }
0x1323   :  { %v5337_v44 = vadd.f32 %v5591_v33, %v5331_v35 }
0x1324   :  { %v5336_v50 = vadd.f32 %v5591_v33, %v5330_v41 }
0x1325   :  { %v5360_v51 = vsel %vm138_vm0, %v5337_v44, 0.0 }
0x1326   :  { %5361 = vadd.xlane.f32.xlu0 %v5360_v51  ;;  %v5357_v45 = vsel %vm138_vm0, %v5336_v50, 0.0 }
0x1327   :  { %5358 = vadd.xlane.f32.xlu1 %v5357_v45 }
0x13b3   :  { %v5362_v46 = vpop.xlane.xlu0 %5361 }
0x13b4   :  { %v5364_v0 = vmul.f32 0.03125, %v5362_v46  ;;  %v5359_v1 = vpop.xlane.xlu1 %5358 }
0x13b5   :  { %v5363_v47 = vmul.f32 0.03125, %v5359_v1 }
0x13b6   :  { %v5366_v53 = vsub.f32 %v5337_v44, %v5364_v0 }
0x13b7   :  { %v5365_v56 = vsub.f32 %v5336_v50, %v5363_v47 }
0x13b8   :  { %v5368_v57 = vmul.f32 %v5366_v53, %v5366_v53 }
0x13b9   :  { %v5367_v48 = vmul.f32 %v5365_v56, %v5365_v56 }
0x13ba   :  { %v5372_v36 = vsel %vm138_vm0, %v5368_v57, 0.0 }
0x13bb   :  { %5373 = vadd.xlane.f32.xlu0 %v5372_v36  ;;  %v5369_v39 = vsel %vm138_vm0, %v5367_v48, 0.0 }
0x13bc   :  { %5370 = vadd.xlane.f32.xlu1 %v5369_v39 }
0x13bd   :  { %6269 = shalt.err (!%p6266_p4)
}
0x13be   :  { %s6270_s7 = scalar_lea.hbm %s7087_s5, 256 }
0x13bf   :  { %p6271_p5 = scmp.ne.s32.totalorder %s7087_s5, %s6270_s7  ;;  %p6274_p6 = scmp.lt.u32.totalorder %s6270_s7, %s7087_s5 }
0x13c1   :  { %p6276_p7 = pnand %p6274_p6, %p6271_p5 }
0x13c3   :  { %6279 = shalt.err (!%p6276_p7)
}
0x13c4   :  { %s6286_s12 = smov 128   ;;  %s6287_s13 = smov 8   ;;  %v5594_v62 = vld [vmem:[%s7084_s2 + $0x30] ss:$0 sm:$0xff]  ;;  %v5595_v3 = vld [vmem:[%s7084_s2 + $0x31] ss:$0 sm:$0xff] }
0x13c5   :  { %5412 = dma.vmem_to_hbm [thread:$0]  %s5407_s3, 256, %s7087_s5, [#allocation3], %s6286_s12, %s6286_s12, %s6287_s13  }
0x1448   :  { %v5374_v52 = vpop.xlane.xlu0 %5373 }
0x1449   :  { %v5376_v2 = vmul.f32 0.03125, %v5374_v52  ;;  %v5371_v58 = vpop.xlane.xlu1 %5370 }
0x144a   :  { %v5375_v42 = vmul.f32 0.03125, %v5371_v58 }
0x144b   :  { %v5378_v43 = vadd.f32 1e-05, %v5376_v2 }
0x144c   :  { %v5377_v49 = vadd.f32 1e-05, %v5375_v42 }
0x144d   :  { %6254 = vrsqrt.f32 %v5378_v43 }
0x144e   :  { %6256 = vrsqrt.f32 %v5377_v49 }
0x1457   :  { %v6255_v59 = vpop.eup %6254 }
0x1458   :  { %v6257_v61 = vpop.eup %6256  ;;  %v5382_v63 = vmul.f32 %v6255_v59, %v5366_v53 }
0x1459   :  { %v5381_v4 = vmul.f32 %v6257_v61, %v5365_v56 }
0x145a   :  { %v5388_v5 = vmul.f32 %v5594_v62, %v5382_v63 }
0x145b   :  { %v5387_v6 = vmul.f32 %v5594_v62, %v5381_v4 }
0x145c   :  { %v5394_v38 = vadd.f32 %v5595_v3, %v5388_v5 }
0x145d   :  { %v5393_v37 = vadd.f32 %v5595_v3, %v5387_v6 }
0x145e   :  { %5396 = vst.msk [vmem:[%s7086_s4 + $0x8] sm:$0xff] %vm138_vm0, %v5394_v38 }
0x145f   :  { %5395 = vst.msk [vmem:[%s7086_s4] sm:$0xff] %vm138_vm0, %v5393_v37 }
0x1460   :  { %6280 = dma.done.wait [#allocation3], 256  }
0x1461   :  { %6281 = vsyncadd [#allocation3], 4294967040 }
0x1462   :  { %5418 = vsyncpa [#allocation3], 1 }

</bundles_post_ra>
